<compile_context>
chip_gen: v7x
topology: tpu7x:2x2x1
jax: 0.10.0
libtpu: 0.0.40
codegen_flags: <defaults>
</compile_context>

<pallas_src>
import jax
import jax.numpy as jnp
from jax.experimental import pallas as pl
from jax.experimental.pallas import tpu as pltpu


def _decoder_block_kernel(x_ref, ecol2_ref, w1_ref, b1_ref, w2_ref, b2_ref,
                          mask_ref, o_ref,
                          up_ref, mid_ref, p_ref):
    """Fused Upsample2x + (3x3 conv + bias + ReLU) x 2 for one batch element.

    x_ref    : (1, H*Cin, W)      input, row-major (image-row, channel) packed
    ecol2_ref: (W, 2*Wp)          0/1 column-dup+pad matrix, padded row twice
    w1_ref   : (Cmid, 9*Cin)      conv1 weights, tap-major im2col layout
    b1_ref   : (Cmid, 1)
    w2_ref   : (Cout, 9*Cmid)     conv2 weights
    b2_ref   : (Cout, 1)
    mask_ref : (1, N)             1.0 on valid extended columns, 0.0 on junk
    o_ref    : (1, Cout, N)       extended flat output (wrapper strips pads)
    up_ref   : (Cin,  (Ho+3)*Wp)  flat zero-padded upsampled input (scratch)
    mid_ref  : (Cmid, (Ho+3)*Wp)  flat zero-padded mid activation (scratch)
    p_ref    : (9*max(Cin,Cmid), N) shared im2col patch buffer (scratch)
    """
    f32 = jnp.float32
    Cmid = w1_ref.shape[0]
    Cin = w1_ref.shape[1] // 9
    HC = x_ref.shape[1]
    H = HC // Cin
    Ho = 2 * H
    Wp = ecol2_ref.shape[1] // 2
    N = o_ref.shape[2]                       # = Ho * Wp  (extended flat length)

    # ---- Stage 0: zero ONLY the never-written border strips -----------------
    # up_ref : top pad row;  bottom pad row + guard row.
    # mid_ref: rows 0..1 (row 1 interior is rewritten by the bulk acc1 store
    #          below, leaving exactly its left-pad element zero); bottom pad
    #          row + guard row.
    up_ref[:, pl.ds(0, Wp)] = jnp.zeros((Cin, Wp), f32)
    up_ref[:, pl.ds((Ho + 1) * Wp, 2 * Wp)] = jnp.zeros((Cin, 2 * Wp), f32)
    mid_ref[:, pl.ds(0, 2 * Wp)] = jnp.zeros((Cmid, 2 * Wp), f32)
    mid_ref[:, pl.ds((Ho + 1) * Wp, 2 * Wp)] = jnp.zeros((Cmid, 2 * Wp), f32)

    # ---- Stage 1: nearest 2x upsample fused with the conv1 zero padding -----
    # One matmul for the whole image: (H*Cin, W) @ (W, 2*Wp).  ecol2 duplicates
    # every input column twice, inserts the left/right zero-pad columns, and
    # emits the padded row TWICE side by side -> each image row needs a single
    # 2*Wp-wide store that covers both duplicated output rows.
    up_all = jax.lax.dot_general(
        x_ref[0, :, :], ecol2_ref[...],
        dimension_numbers=(((1,), (0,)), ((), ())),
        preferred_element_type=f32)                          # (H*Cin, 2*Wp)
    for h in range(H):   # TODO(synk): lax.fori_loop / grid axis for large H
        up_ref[:, pl.ds((2 * h + 1) * Wp, 2 * Wp)] = (
            up_all[h * Cin:(h + 1) * Cin, :])

    # ---- Stage 2: conv1 as a single im2col matmul (K = 9*Cin) ---------------
    # p[(3*ky+kx)*Cin + c, y*Wp + xe] = up_pad[c, y+ky, xe+kx]
    for ky in range(3):
        for kx in range(3):
            k = 3 * ky + kx
            p_ref[pl.ds(k * Cin, Cin), :] = up_ref[:, pl.ds(ky * Wp + kx, N)]

    acc1 = jax.lax.dot_general(
        w1_ref[...], p_ref[pl.ds(0, 9 * Cin), :],
        dimension_numbers=(((1,), (0,)), ((), ())),
        preferred_element_type=f32)                          # (Cmid, N)
    # bias + ReLU; junk columns (xe >= 2W) are zeroed so they land exactly on
    # the pad columns of the next padded buffer.
    acc1 = jnp.maximum(acc1 + b1_ref[...], 0.0) * mask_ref[...]

    # Extended layout -> padded layout is a constant flat offset of Wp+1.
    mid_ref[:, pl.ds(Wp + 1, N)] = acc1

    # ---- Stage 3: conv2 as a single im2col matmul (K = 9*Cmid) --------------
    for ky in range(3):
        for kx in range(3):
            k = 3 * ky + kx
            p_ref[pl.ds(k * Cmid, Cmid), :] = mid_ref[:, pl.ds(ky * Wp + kx, N)]

    acc2 = jax.lax.dot_general(
        w2_ref[...], p_ref[pl.ds(0, 9 * Cmid), :],
        dimension_numbers=(((1,), (0,)), ((), ())),
        preferred_element_type=f32)                          # (Cout, N)
    acc2 = jnp.maximum(acc2 + b2_ref[...], 0.0)

    # ---- Stage 4: ONE bulk lane-dense store of the extended activation ------
    # (the 2 junk columns per row are stripped by a reshape+slice in the
    #  wrapper; no per-row masked stores / relayouts in the kernel).
    o_ref[0, :, :] = acc2.astype(o_ref.dtype)


@jax.jit
def decoder_block_forward(x_nchw, params):
    """DecoderBlock (is_deconv=False). Input/output NCHW, matching PyTorch."""
    B, Cin, H, W = x_nchw.shape
    w1, b1 = params["w1"], params["b1"]          # (3,3,Cin,Cmid), (Cmid,)
    w2, b2 = params["w2"], params["b2"]          # (3,3,Cmid,Cout), (Cout,)
    Cmid = w1.shape[-1]
    Cout = w2.shape[-1]

    Ho, Wo = 2 * H, 2 * W
    Wp = Wo + 2                                  # padded row width
    N = Ho * Wp                                  # extended flat length
    NBUF = (Ho + 3) * Wp                         # Hp rows + 1 guard row

    # im2col weight layout: row (3*ky+kx)*Cin + c  <->  w[ky, kx, c, :]
    w1m = w1.reshape(9 * Cin, Cmid).T            # (Cmid, 9*Cin)
    w2m = w2.reshape(9 * Cmid, Cout).T           # (Cout, 9*Cmid)
    b1m = b1.reshape(Cmid, 1)
    b2m = b2.reshape(Cout, 1)

    # Column duplication + pad matrix: ecol[w, j] = 1 iff 1<=j<=2W and
    # (j-1)//2 == w; duplicated side-by-side so one matmul also performs the
    # nearest row-duplication store merge (two output rows per store).
    j = jnp.arange(Wp)
    wi = jnp.arange(W)
    ecol = ((j[None, :] >= 1) & (j[None, :] <= Wo)
            & (((j[None, :] - 1) // 2) == wi[:, None])).astype(jnp.float32)
    ecol2 = jnp.concatenate([ecol, ecol], axis=1)                 # (W, 2*Wp)

    # Valid-column mask over the extended flat layout.
    t = jnp.arange(N)
    mask = ((t % Wp) < Wo).astype(jnp.float32)[None, :]           # (1, N)

    # Pack input as (B, H*Cin, W): image-row-major so the kernel's per-row
    # channel slabs are contiguous sublane slices (no in-kernel relayout).
    x_hc = jnp.transpose(x_nchw, (0, 2, 1, 3)).reshape(B, H * Cin, W)

    out_ext = pl.pallas_call(
        _decoder_block_kernel,
        out_shape=jax.ShapeDtypeStruct((B, Cout, N), x_nchw.dtype),
        grid_spec=pltpu.PrefetchScalarGridSpec(
            num_scalar_prefetch=0,
            grid=(B,),
            in_specs=[
                pl.BlockSpec((1, H * Cin, W), lambda b: (b, 0, 0)),
                pl.BlockSpec((W, 2 * Wp), lambda b: (0, 0)),
                pl.BlockSpec((Cmid, 9 * Cin), lambda b: (0, 0)),
                pl.BlockSpec((Cmid, 1), lambda b: (0, 0)),
                pl.BlockSpec((Cout, 9 * Cmid), lambda b: (0, 0)),
                pl.BlockSpec((Cout, 1), lambda b: (0, 0)),
                pl.BlockSpec((1, N), lambda b: (0, 0)),
            ],
            out_specs=pl.BlockSpec((1, Cout, N), lambda b: (b, 0, 0)),
            scratch_shapes=[
                pltpu.VMEM((Cin, NBUF), jnp.float32),            # padded up x
                pltpu.VMEM((Cmid, NBUF), jnp.float32),           # padded mid
                pltpu.VMEM((9 * max(Cin, Cmid), N), jnp.float32),  # shared patch
            ],
        ),
        # No vmem_limit_bytes override: default scoped VMEM is ample here and
        # leaves headroom for double-buffered blocks (v7x: 64 MiB total/TC).
        compiler_params=pltpu.CompilerParams(
            dimension_semantics=("parallel",)),
    )(x_hc, ecol2, w1m, b1m, w2m, b2m, mask)

    # Strip the 2 pad columns per row with a cheap XLA reshape+slice.
    return out_ext.reshape(B, Cout, Ho, Wp)[:, :, :, :Wo]


def init_decoder_block_params(key, in_channels, middle_channels, out_channels):
    k1, k2, k3, k4 = jax.random.split(key, 4)
    scale1 = 1.0 / jnp.sqrt(in_channels * 9.0)
    scale2 = 1.0 / jnp.sqrt(middle_channels * 9.0)
    return {
        "w1": jax.random.uniform(k1, (3, 3, in_channels, middle_channels),
                                 jnp.float32, -scale1, scale1),
        "b1": jax.random.uniform(k2, (middle_channels,), jnp.float32,
                                 -scale1, scale1),
        "w2": jax.random.uniform(k3, (3, 3, middle_channels, out_channels),
                                 jnp.float32, -scale2, scale2),
        "b2": jax.random.uniform(k4, (out_channels,), jnp.float32,
                                 -scale2, scale2),
    }


def _reference_forward(x_nchw, params):
    """Pure-JAX reference (lax.conv) for correctness checking."""
    x = jnp.transpose(x_nchw, (0, 2, 3, 1))
    x = jnp.repeat(jnp.repeat(x, 2, axis=1), 2, axis=2)   # nearest 2x upsample

    def conv(x, w, b):
        y = jax.lax.conv_general_dilated(
            x, w, window_strides=(1, 1), padding="SAME",
            dimension_numbers=("NHWC", "HWIO", "NHWC"))
        return jnp.maximum(y + b[None, None, None, :], 0.0)

    x = conv(x, params["w1"], params["b1"])
    x = conv(x, params["w2"], params["b2"])
    return jnp.transpose(x, (0, 3, 1, 2))


if __name__ == "__main__":
    key = jax.random.PRNGKey(0)
    k_x, k_p = jax.random.split(key)

    B, Cin, H, W = 2, 4, 16, 16
    Cmid, Cout = 8, 4

    x = jax.random.normal(k_x, (B, Cin, H, W), jnp.float32)
    params = init_decoder_block_params(k_p, Cin, Cmid, Cout)

    out = decoder_block_forward(x, params)
    out = jax.block_until_ready(out)

    assert out.shape == (B, Cout, 2 * H, 2 * W), out.shape

    ref = jax.block_until_ready(_reference_forward(x, params))
    assert jnp.allclose(out, ref, atol=1e-4, rtol=1e-4), (
        float(jnp.max(jnp.abs(out - ref))))

    print("KERNEL_OK")
</pallas_src>

<mosaic_0001>
module attributes {stable_mosaic.version = 11 : i64} {
  func.func @_decoder_block_kernel(%arg0: i32, %arg1: memref<1x64x16xf32, #tpu.memory_space<vmem>>, %arg2: memref<16x68xf32, #tpu.memory_space<vmem>>, %arg3: memref<8x36xf32, #tpu.memory_space<vmem>>, %arg4: memref<8x1xf32, #tpu.memory_space<vmem>>, %arg5: memref<4x72xf32, #tpu.memory_space<vmem>>, %arg6: memref<4x1xf32, #tpu.memory_space<vmem>>, %arg7: memref<1x1088xf32, #tpu.memory_space<vmem>>, %arg8: memref<1x4x1088xf32, #tpu.memory_space<vmem>>, %arg9: memref<4x1190xf32, #tpu.memory_space<vmem>>, %arg10: memref<8x1190xf32, #tpu.memory_space<vmem>>, %arg11: memref<72x1088xf32, #tpu.memory_space<vmem>>) attributes {dimension_semantics = [#tpu.dimension_semantics<parallel>], iteration_bounds = array<i64: 2>, scalar_prefetch = 0 : i64, scratch_operands = 3 : i64, tpu.core_type = #tpu.core_type<tc>, window_params = [{transform_indices = @transform_0, window_bounds = array<i64: 1, 64, 16>}, {pipeline_mode = #tpu.pipeline_mode<synchronous>, transform_indices = @transform_1, window_bounds = array<i64: 16, 68>}, {pipeline_mode = #tpu.pipeline_mode<synchronous>, transform_indices = @transform_2, window_bounds = array<i64: 8, 36>}, {pipeline_mode = #tpu.pipeline_mode<synchronous>, transform_indices = @transform_3, window_bounds = array<i64: 8, 1>}, {pipeline_mode = #tpu.pipeline_mode<synchronous>, transform_indices = @transform_4, window_bounds = array<i64: 4, 72>}, {pipeline_mode = #tpu.pipeline_mode<synchronous>, transform_indices = @transform_5, window_bounds = array<i64: 4, 1>}, {pipeline_mode = #tpu.pipeline_mode<synchronous>, transform_indices = @transform_6, window_bounds = array<i64: 1, 1088>}, {transform_indices = @transform_7, window_bounds = array<i64: 1, 4, 1088>}]} {
    %cst = arith.constant 0.000000e+00 : f32
    %0 = vector.broadcast %cst : f32 to vector<4x34xf32>
    %c0 = arith.constant 0 : index
    %c0_0 = arith.constant 0 : index
    %1 = vector.load %arg9[%c0, %c0_0] : memref<4x1190xf32, #tpu.memory_space<vmem>>, vector<4x34xf32>
    tpu.vector_store %arg9[%c0, %c0_0], %0 {strides = array<i32>} : memref<4x1190xf32, #tpu.memory_space<vmem>>, vector<4x34xf32>,
    %cst_1 = arith.constant 0.000000e+00 : f32
    %2 = vector.broadcast %cst_1 : f32 to vector<4x68xf32>
    %c0_2 = arith.constant 0 : index
    %c1122 = arith.constant 1122 : index
    %3 = vector.load %arg9[%c0_2, %c1122] : memref<4x1190xf32, #tpu.memory_space<vmem>>, vector<4x68xf32>
    tpu.vector_store %arg9[%c0_2, %c1122], %2 {strides = array<i32>} : memref<4x1190xf32, #tpu.memory_space<vmem>>, vector<4x68xf32>,
    %cst_3 = arith.constant 0.000000e+00 : f32
    %4 = vector.broadcast %cst_3 : f32 to vector<8x68xf32>
    %c0_4 = arith.constant 0 : index
    %c0_5 = arith.constant 0 : index
    %5 = vector.load %arg10[%c0_4, %c0_5] : memref<8x1190xf32, #tpu.memory_space<vmem>>, vector<8x68xf32>
    tpu.vector_store %arg10[%c0_4, %c0_5], %4 {strides = array<i32>} : memref<8x1190xf32, #tpu.memory_space<vmem>>, vector<8x68xf32>,
    %cst_6 = arith.constant 0.000000e+00 : f32
    %6 = vector.broadcast %cst_6 : f32 to vector<8x68xf32>
    %c0_7 = arith.constant 0 : index
    %c1122_8 = arith.constant 1122 : index
    %7 = vector.load %arg10[%c0_7, %c1122_8] : memref<8x1190xf32, #tpu.memory_space<vmem>>, vector<8x68xf32>
    tpu.vector_store %arg10[%c0_7, %c1122_8], %6 {strides = array<i32>} : memref<8x1190xf32, #tpu.memory_space<vmem>>, vector<8x68xf32>,
    %c0_9 = arith.constant 0 : index
    %c0_10 = arith.constant 0 : index
    %c0_11 = arith.constant 0 : index
    %8 = vector.load %arg1[%c0_9, %c0_10, %c0_11] : memref<1x64x16xf32, #tpu.memory_space<vmem>>, vector<1x64x16xf32>
    %9 = vector.shape_cast %8 : vector<1x64x16xf32> to vector<64x16xf32>
    %c0_12 = arith.constant 0 : index
    %c0_13 = arith.constant 0 : index
    %10 = vector.load %arg2[%c0_12, %c0_13] : memref<16x68xf32, #tpu.memory_space<vmem>>, vector<16x68xf32>
    %cst_14 = arith.constant dense<0.000000e+00> : vector<64x68xf32>
    %11 = tpu.matmul %9, %10, %cst_14 {dimension_numbers = #tpu.dot_dimension_numbers<[1], [0], [0], [1], [0, 0, 1, 1], [], []>} : vector<64x16xf32>, vector<16x68xf32>, vector<64x68xf32> -> vector<64x68xf32>
    %12 = vector.extract_strided_slice %11 {offsets = [0, 0], sizes = [4, 68], strides = [1, 1]} : vector<64x68xf32> to vector<4x68xf32>
    %c0_15 = arith.constant 0 : index
    %c34 = arith.constant 34 : index
    %13 = vector.load %arg9[%c0_15, %c34] : memref<4x1190xf32, #tpu.memory_space<vmem>>, vector<4x68xf32>
    tpu.vector_store %arg9[%c0_15, %c34], %12 {strides = array<i32>} : memref<4x1190xf32, #tpu.memory_space<vmem>>, vector<4x68xf32>,
    %14 = vector.extract_strided_slice %11 {offsets = [4, 0], sizes = [4, 68], strides = [1, 1]} : vector<64x68xf32> to vector<4x68xf32>
    %c0_16 = arith.constant 0 : index
    %c102 = arith.constant 102 : index
    %15 = vector.load %arg9[%c0_16, %c102] : memref<4x1190xf32, #tpu.memory_space<vmem>>, vector<4x68xf32>
    tpu.vector_store %arg9[%c0_16, %c102], %14 {strides = array<i32>} : memref<4x1190xf32, #tpu.memory_space<vmem>>, vector<4x68xf32>,
    %16 = vector.extract_strided_slice %11 {offsets = [8, 0], sizes = [4, 68], strides = [1, 1]} : vector<64x68xf32> to vector<4x68xf32>
    %c0_17 = arith.constant 0 : index
    %c170 = arith.constant 170 : index
    %17 = vector.load %arg9[%c0_17, %c170] : memref<4x1190xf32, #tpu.memory_space<vmem>>, vector<4x68xf32>
    tpu.vector_store %arg9[%c0_17, %c170], %16 {strides = array<i32>} : memref<4x1190xf32, #tpu.memory_space<vmem>>, vector<4x68xf32>,
    %18 = vector.extract_strided_slice %11 {offsets = [12, 0], sizes = [4, 68], strides = [1, 1]} : vector<64x68xf32> to vector<4x68xf32>
    %c0_18 = arith.constant 0 : index
    %c238 = arith.constant 238 : index
    %19 = vector.load %arg9[%c0_18, %c238] : memref<4x1190xf32, #tpu.memory_space<vmem>>, vector<4x68xf32>
    tpu.vector_store %arg9[%c0_18, %c238], %18 {strides = array<i32>} : memref<4x1190xf32, #tpu.memory_space<vmem>>, vector<4x68xf32>,
    %20 = vector.extract_strided_slice %11 {offsets = [16, 0], sizes = [4, 68], strides = [1, 1]} : vector<64x68xf32> to vector<4x68xf32>
    %c0_19 = arith.constant 0 : index
    %c306 = arith.constant 306 : index
    %21 = vector.load %arg9[%c0_19, %c306] : memref<4x1190xf32, #tpu.memory_space<vmem>>, vector<4x68xf32>
    tpu.vector_store %arg9[%c0_19, %c306], %20 {strides = array<i32>} : memref<4x1190xf32, #tpu.memory_space<vmem>>, vector<4x68xf32>,
    %22 = vector.extract_strided_slice %11 {offsets = [20, 0], sizes = [4, 68], strides = [1, 1]} : vector<64x68xf32> to vector<4x68xf32>
    %c0_20 = arith.constant 0 : index
    %c374 = arith.constant 374 : index
    %23 = vector.load %arg9[%c0_20, %c374] : memref<4x1190xf32, #tpu.memory_space<vmem>>, vector<4x68xf32>
    tpu.vector_store %arg9[%c0_20, %c374], %22 {strides = array<i32>} : memref<4x1190xf32, #tpu.memory_space<vmem>>, vector<4x68xf32>,
    %24 = vector.extract_strided_slice %11 {offsets = [24, 0], sizes = [4, 68], strides = [1, 1]} : vector<64x68xf32> to vector<4x68xf32>
    %c0_21 = arith.constant 0 : index
    %c442 = arith.constant 442 : index
    %25 = vector.load %arg9[%c0_21, %c442] : memref<4x1190xf32, #tpu.memory_space<vmem>>, vector<4x68xf32>
    tpu.vector_store %arg9[%c0_21, %c442], %24 {strides = array<i32>} : memref<4x1190xf32, #tpu.memory_space<vmem>>, vector<4x68xf32>,
    %26 = vector.extract_strided_slice %11 {offsets = [28, 0], sizes = [4, 68], strides = [1, 1]} : vector<64x68xf32> to vector<4x68xf32>
    %c0_22 = arith.constant 0 : index
    %c510 = arith.constant 510 : index
    %27 = vector.load %arg9[%c0_22, %c510] : memref<4x1190xf32, #tpu.memory_space<vmem>>, vector<4x68xf32>
    tpu.vector_store %arg9[%c0_22, %c510], %26 {strides = array<i32>} : memref<4x1190xf32, #tpu.memory_space<vmem>>, vector<4x68xf32>,
    %28 = vector.extract_strided_slice %11 {offsets = [32, 0], sizes = [4, 68], strides = [1, 1]} : vector<64x68xf32> to vector<4x68xf32>
    %c0_23 = arith.constant 0 : index
    %c578 = arith.constant 578 : index
    %29 = vector.load %arg9[%c0_23, %c578] : memref<4x1190xf32, #tpu.memory_space<vmem>>, vector<4x68xf32>
    tpu.vector_store %arg9[%c0_23, %c578], %28 {strides = array<i32>} : memref<4x1190xf32, #tpu.memory_space<vmem>>, vector<4x68xf32>,
    %30 = vector.extract_strided_slice %11 {offsets = [36, 0], sizes = [4, 68], strides = [1, 1]} : vector<64x68xf32> to vector<4x68xf32>
    %c0_24 = arith.constant 0 : index
    %c646 = arith.constant 646 : index
    %31 = vector.load %arg9[%c0_24, %c646] : memref<4x1190xf32, #tpu.memory_space<vmem>>, vector<4x68xf32>
    tpu.vector_store %arg9[%c0_24, %c646], %30 {strides = array<i32>} : memref<4x1190xf32, #tpu.memory_space<vmem>>, vector<4x68xf32>,
    %32 = vector.extract_strided_slice %11 {offsets = [40, 0], sizes = [4, 68], strides = [1, 1]} : vector<64x68xf32> to vector<4x68xf32>
    %c0_25 = arith.constant 0 : index
    %c714 = arith.constant 714 : index
    %33 = vector.load %arg9[%c0_25, %c714] : memref<4x1190xf32, #tpu.memory_space<vmem>>, vector<4x68xf32>
    tpu.vector_store %arg9[%c0_25, %c714], %32 {strides = array<i32>} : memref<4x1190xf32, #tpu.memory_space<vmem>>, vector<4x68xf32>,
    %34 = vector.extract_strided_slice %11 {offsets = [44, 0], sizes = [4, 68], strides = [1, 1]} : vector<64x68xf32> to vector<4x68xf32>
    %c0_26 = arith.constant 0 : index
    %c782 = arith.constant 782 : index
    %35 = vector.load %arg9[%c0_26, %c782] : memref<4x1190xf32, #tpu.memory_space<vmem>>, vector<4x68xf32>
    tpu.vector_store %arg9[%c0_26, %c782], %34 {strides = array<i32>} : memref<4x1190xf32, #tpu.memory_space<vmem>>, vector<4x68xf32>,
    %36 = vector.extract_strided_slice %11 {offsets = [48, 0], sizes = [4, 68], strides = [1, 1]} : vector<64x68xf32> to vector<4x68xf32>
    %c0_27 = arith.constant 0 : index
    %c850 = arith.constant 850 : index
    %37 = vector.load %arg9[%c0_27, %c850] : memref<4x1190xf32, #tpu.memory_space<vmem>>, vector<4x68xf32>
    tpu.vector_store %arg9[%c0_27, %c850], %36 {strides = array<i32>} : memref<4x1190xf32, #tpu.memory_space<vmem>>, vector<4x68xf32>,
    %38 = vector.extract_strided_slice %11 {offsets = [52, 0], sizes = [4, 68], strides = [1, 1]} : vector<64x68xf32> to vector<4x68xf32>
    %c0_28 = arith.constant 0 : index
    %c918 = arith.constant 918 : index
    %39 = vector.load %arg9[%c0_28, %c918] : memref<4x1190xf32, #tpu.memory_space<vmem>>, vector<4x68xf32>
    tpu.vector_store %arg9[%c0_28, %c918], %38 {strides = array<i32>} : memref<4x1190xf32, #tpu.memory_space<vmem>>, vector<4x68xf32>,
    %40 = vector.extract_strided_slice %11 {offsets = [56, 0], sizes = [4, 68], strides = [1, 1]} : vector<64x68xf32> to vector<4x68xf32>
    %c0_29 = arith.constant 0 : index
    %c986 = arith.constant 986 : index
    %41 = vector.load %arg9[%c0_29, %c986] : memref<4x1190xf32, #tpu.memory_space<vmem>>, vector<4x68xf32>
    tpu.vector_store %arg9[%c0_29, %c986], %40 {strides = array<i32>} : memref<4x1190xf32, #tpu.memory_space<vmem>>, vector<4x68xf32>,
    %42 = vector.extract_strided_slice %11 {offsets = [60, 0], sizes = [4, 68], strides = [1, 1]} : vector<64x68xf32> to vector<4x68xf32>
    %c0_30 = arith.constant 0 : index
    %c1054 = arith.constant 1054 : index
    %43 = vector.load %arg9[%c0_30, %c1054] : memref<4x1190xf32, #tpu.memory_space<vmem>>, vector<4x68xf32>
    tpu.vector_store %arg9[%c0_30, %c1054], %42 {strides = array<i32>} : memref<4x1190xf32, #tpu.memory_space<vmem>>, vector<4x68xf32>,
    %c0_31 = arith.constant 0 : index
    %c0_32 = arith.constant 0 : index
    %44 = vector.load %arg9[%c0_31, %c0_32] : memref<4x1190xf32, #tpu.memory_space<vmem>>, vector<4x1088xf32>
    %c0_33 = arith.constant 0 : index
    %c0_34 = arith.constant 0 : index
    %45 = vector.load %arg11[%c0_33, %c0_34] : memref<72x1088xf32, #tpu.memory_space<vmem>>, vector<4x1088xf32>
    tpu.vector_store %arg11[%c0_33, %c0_34], %44 {strides = array<i32>} : memref<72x1088xf32, #tpu.memory_space<vmem>>, vector<4x1088xf32>,
    %c0_35 = arith.constant 0 : index
    %c1 = arith.constant 1 : index
    %46 = vector.load %arg9[%c0_35, %c1] : memref<4x1190xf32, #tpu.memory_space<vmem>>, vector<4x1088xf32>
    %c4 = arith.constant 4 : index
    %c0_36 = arith.constant 0 : index
    %47 = vector.load %arg11[%c4, %c0_36] : memref<72x1088xf32, #tpu.memory_space<vmem>>, vector<4x1088xf32>
    tpu.vector_store %arg11[%c4, %c0_36], %46 {strides = array<i32>} : memref<72x1088xf32, #tpu.memory_space<vmem>>, vector<4x1088xf32>,
    %c0_37 = arith.constant 0 : index
    %c2 = arith.constant 2 : index
    %48 = vector.load %arg9[%c0_37, %c2] : memref<4x1190xf32, #tpu.memory_space<vmem>>, vector<4x1088xf32>
    %c8 = arith.constant 8 : index
    %c0_38 = arith.constant 0 : index
    %49 = vector.load %arg11[%c8, %c0_38] : memref<72x1088xf32, #tpu.memory_space<vmem>>, vector<4x1088xf32>
    tpu.vector_store %arg11[%c8, %c0_38], %48 {strides = array<i32>} : memref<72x1088xf32, #tpu.memory_space<vmem>>, vector<4x1088xf32>,
    %c0_39 = arith.constant 0 : index
    %c34_40 = arith.constant 34 : index
    %50 = vector.load %arg9[%c0_39, %c34_40] : memref<4x1190xf32, #tpu.memory_space<vmem>>, vector<4x1088xf32>
    %c12 = arith.constant 12 : index
    %c0_41 = arith.constant 0 : index
    %51 = vector.load %arg11[%c12, %c0_41] : memref<72x1088xf32, #tpu.memory_space<vmem>>, vector<4x1088xf32>
    tpu.vector_store %arg11[%c12, %c0_41], %50 {strides = array<i32>} : memref<72x1088xf32, #tpu.memory_space<vmem>>, vector<4x1088xf32>,
    %c0_42 = arith.constant 0 : index
    %c35 = arith.constant 35 : index
    %52 = vector.load %arg9[%c0_42, %c35] : memref<4x1190xf32, #tpu.memory_space<vmem>>, vector<4x1088xf32>
    %c16 = arith.constant 16 : index
    %c0_43 = arith.constant 0 : index
    %53 = vector.load %arg11[%c16, %c0_43] : memref<72x1088xf32, #tpu.memory_space<vmem>>, vector<4x1088xf32>
    tpu.vector_store %arg11[%c16, %c0_43], %52 {strides = array<i32>} : memref<72x1088xf32, #tpu.memory_space<vmem>>, vector<4x1088xf32>,
    %c0_44 = arith.constant 0 : index
    %c36 = arith.constant 36 : index
    %54 = vector.load %arg9[%c0_44, %c36] : memref<4x1190xf32, #tpu.memory_space<vmem>>, vector<4x1088xf32>
    %c20 = arith.constant 20 : index
    %c0_45 = arith.constant 0 : index
    %55 = vector.load %arg11[%c20, %c0_45] : memref<72x1088xf32, #tpu.memory_space<vmem>>, vector<4x1088xf32>
    tpu.vector_store %arg11[%c20, %c0_45], %54 {strides = array<i32>} : memref<72x1088xf32, #tpu.memory_space<vmem>>, vector<4x1088xf32>,
    %c0_46 = arith.constant 0 : index
    %c68 = arith.constant 68 : index
    %56 = vector.load %arg9[%c0_46, %c68] : memref<4x1190xf32, #tpu.memory_space<vmem>>, vector<4x1088xf32>
    %c24 = arith.constant 24 : index
    %c0_47 = arith.constant 0 : index
    %57 = vector.load %arg11[%c24, %c0_47] : memref<72x1088xf32, #tpu.memory_space<vmem>>, vector<4x1088xf32>
    tpu.vector_store %arg11[%c24, %c0_47], %56 {strides = array<i32>} : memref<72x1088xf32, #tpu.memory_space<vmem>>, vector<4x1088xf32>,
    %c0_48 = arith.constant 0 : index
    %c69 = arith.constant 69 : index
    %58 = vector.load %arg9[%c0_48, %c69] : memref<4x1190xf32, #tpu.memory_space<vmem>>, vector<4x1088xf32>
    %c28 = arith.constant 28 : index
    %c0_49 = arith.constant 0 : index
    %59 = vector.load %arg11[%c28, %c0_49] : memref<72x1088xf32, #tpu.memory_space<vmem>>, vector<4x1088xf32>
    tpu.vector_store %arg11[%c28, %c0_49], %58 {strides = array<i32>} : memref<72x1088xf32, #tpu.memory_space<vmem>>, vector<4x1088xf32>,
    %c0_50 = arith.constant 0 : index
    %c70 = arith.constant 70 : index
    %60 = vector.load %arg9[%c0_50, %c70] : memref<4x1190xf32, #tpu.memory_space<vmem>>, vector<4x1088xf32>
    %c32 = arith.constant 32 : index
    %c0_51 = arith.constant 0 : index
    %61 = vector.load %arg11[%c32, %c0_51] : memref<72x1088xf32, #tpu.memory_space<vmem>>, vector<4x1088xf32>
    tpu.vector_store %arg11[%c32, %c0_51], %60 {strides = array<i32>} : memref<72x1088xf32, #tpu.memory_space<vmem>>, vector<4x1088xf32>,
    %c0_52 = arith.constant 0 : index
    %c0_53 = arith.constant 0 : index
    %62 = vector.load %arg3[%c0_52, %c0_53] : memref<8x36xf32, #tpu.memory_space<vmem>>, vector<8x36xf32>
    %c0_54 = arith.constant 0 : index
    %c0_55 = arith.constant 0 : index
    %63 = vector.load %arg11[%c0_54, %c0_55] : memref<72x1088xf32, #tpu.memory_space<vmem>>, vector<36x1088xf32>
    %cst_56 = arith.constant dense<0.000000e+00> : vector<8x1088xf32>
    %64 = tpu.matmul %62, %63, %cst_56 {dimension_numbers = #tpu.dot_dimension_numbers<[1], [0], [0], [1], [0, 0, 1, 1], [], []>} : vector<8x36xf32>, vector<36x1088xf32>, vector<8x1088xf32> -> vector<8x1088xf32>
    %c0_57 = arith.constant 0 : index
    %c0_58 = arith.constant 0 : index
    %65 = vector.load %arg4[%c0_57, %c0_58] : memref<8x1xf32, #tpu.memory_space<vmem>>, vector<8x1xf32>
    %66 = vector.broadcast %65 : vector<8x1xf32> to vector<8x1088xf32>
    %67 = arith.addf %64, %66 : vector<8x1088xf32>
    %cst_59 = arith.constant 0.000000e+00 : f32
    %68 = vector.broadcast %cst_59 : f32 to vector<8x1088xf32>
    %69 = arith.maximumf %67, %68 : vector<8x1088xf32>
    %c0_60 = arith.constant 0 : index
    %c0_61 = arith.constant 0 : index
    %70 = vector.load %arg7[%c0_60, %c0_61] : memref<1x1088xf32, #tpu.memory_space<vmem>>, vector<1x1088xf32>
    %71 = vector.broadcast %70 : vector<1x1088xf32> to vector<8x1088xf32>
    %72 = arith.mulf %69, %71 : vector<8x1088xf32>
    %c0_62 = arith.constant 0 : index
    %c35_63 = arith.constant 35 : index
    %73 = vector.load %arg10[%c0_62, %c35_63] : memref<8x1190xf32, #tpu.memory_space<vmem>>, vector<8x1088xf32>
    tpu.vector_store %arg10[%c0_62, %c35_63], %72 {strides = array<i32>} : memref<8x1190xf32, #tpu.memory_space<vmem>>, vector<8x1088xf32>,
    %c0_64 = arith.constant 0 : index
    %c0_65 = arith.constant 0 : index
    %74 = vector.load %arg10[%c0_64, %c0_65] : memref<8x1190xf32, #tpu.memory_space<vmem>>, vector<8x1088xf32>
    %c0_66 = arith.constant 0 : index
    %c0_67 = arith.constant 0 : index
    %75 = vector.load %arg11[%c0_66, %c0_67] : memref<72x1088xf32, #tpu.memory_space<vmem>>, vector<8x1088xf32>
    tpu.vector_store %arg11[%c0_66, %c0_67], %74 {strides = array<i32>} : memref<72x1088xf32, #tpu.memory_space<vmem>>, vector<8x1088xf32>,
    %c0_68 = arith.constant 0 : index
    %c1_69 = arith.constant 1 : index
    %76 = vector.load %arg10[%c0_68, %c1_69] : memref<8x1190xf32, #tpu.memory_space<vmem>>, vector<8x1088xf32>
    %c8_70 = arith.constant 8 : index
    %c0_71 = arith.constant 0 : index
    %77 = vector.load %arg11[%c8_70, %c0_71] : memref<72x1088xf32, #tpu.memory_space<vmem>>, vector<8x1088xf32>
    tpu.vector_store %arg11[%c8_70, %c0_71], %76 {strides = array<i32>} : memref<72x1088xf32, #tpu.memory_space<vmem>>, vector<8x1088xf32>,
    %c0_72 = arith.constant 0 : index
    %c2_73 = arith.constant 2 : index
    %78 = vector.load %arg10[%c0_72, %c2_73] : memref<8x1190xf32, #tpu.memory_space<vmem>>, vector<8x1088xf32>
    %c16_74 = arith.constant 16 : index
    %c0_75 = arith.constant 0 : index
    %79 = vector.load %arg11[%c16_74, %c0_75] : memref<72x1088xf32, #tpu.memory_space<vmem>>, vector<8x1088xf32>
    tpu.vector_store %arg11[%c16_74, %c0_75], %78 {strides = array<i32>} : memref<72x1088xf32, #tpu.memory_space<vmem>>, vector<8x1088xf32>,
    %c0_76 = arith.constant 0 : index
    %c34_77 = arith.constant 34 : index
    %80 = vector.load %arg10[%c0_76, %c34_77] : memref<8x1190xf32, #tpu.memory_space<vmem>>, vector<8x1088xf32>
    %c24_78 = arith.constant 24 : index
    %c0_79 = arith.constant 0 : index
    %81 = vector.load %arg11[%c24_78, %c0_79] : memref<72x1088xf32, #tpu.memory_space<vmem>>, vector<8x1088xf32>
    tpu.vector_store %arg11[%c24_78, %c0_79], %80 {strides = array<i32>} : memref<72x1088xf32, #tpu.memory_space<vmem>>, vector<8x1088xf32>,
    %c0_80 = arith.constant 0 : index
    %c35_81 = arith.constant 35 : index
    %82 = vector.load %arg10[%c0_80, %c35_81] : memref<8x1190xf32, #tpu.memory_space<vmem>>, vector<8x1088xf32>
    %c32_82 = arith.constant 32 : index
    %c0_83 = arith.constant 0 : index
    %83 = vector.load %arg11[%c32_82, %c0_83] : memref<72x1088xf32, #tpu.memory_space<vmem>>, vector<8x1088xf32>
    tpu.vector_store %arg11[%c32_82, %c0_83], %82 {strides = array<i32>} : memref<72x1088xf32, #tpu.memory_space<vmem>>, vector<8x1088xf32>,
    %c0_84 = arith.constant 0 : index
    %c36_85 = arith.constant 36 : index
    %84 = vector.load %arg10[%c0_84, %c36_85] : memref<8x1190xf32, #tpu.memory_space<vmem>>, vector<8x1088xf32>
    %c40 = arith.constant 40 : index
    %c0_86 = arith.constant 0 : index
    %85 = vector.load %arg11[%c40, %c0_86] : memref<72x1088xf32, #tpu.memory_space<vmem>>, vector<8x1088xf32>
    tpu.vector_store %arg11[%c40, %c0_86], %84 {strides = array<i32>} : memref<72x1088xf32, #tpu.memory_space<vmem>>, vector<8x1088xf32>,
    %c0_87 = arith.constant 0 : index
    %c68_88 = arith.constant 68 : index
    %86 = vector.load %arg10[%c0_87, %c68_88] : memref<8x1190xf32, #tpu.memory_space<vmem>>, vector<8x1088xf32>
    %c48 = arith.constant 48 : index
    %c0_89 = arith.constant 0 : index
    %87 = vector.load %arg11[%c48, %c0_89] : memref<72x1088xf32, #tpu.memory_space<vmem>>, vector<8x1088xf32>
    tpu.vector_store %arg11[%c48, %c0_89], %86 {strides = array<i32>} : memref<72x1088xf32, #tpu.memory_space<vmem>>, vector<8x1088xf32>,
    %c0_90 = arith.constant 0 : index
    %c69_91 = arith.constant 69 : index
    %88 = vector.load %arg10[%c0_90, %c69_91] : memref<8x1190xf32, #tpu.memory_space<vmem>>, vector<8x1088xf32>
    %c56 = arith.constant 56 : index
    %c0_92 = arith.constant 0 : index
    %89 = vector.load %arg11[%c56, %c0_92] : memref<72x1088xf32, #tpu.memory_space<vmem>>, vector<8x1088xf32>
    tpu.vector_store %arg11[%c56, %c0_92], %88 {strides = array<i32>} : memref<72x1088xf32, #tpu.memory_space<vmem>>, vector<8x1088xf32>,
    %c0_93 = arith.constant 0 : index
    %c70_94 = arith.constant 70 : index
    %90 = vector.load %arg10[%c0_93, %c70_94] : memref<8x1190xf32, #tpu.memory_space<vmem>>, vector<8x1088xf32>
    %c64 = arith.constant 64 : index
    %c0_95 = arith.constant 0 : index
    %91 = vector.load %arg11[%c64, %c0_95] : memref<72x1088xf32, #tpu.memory_space<vmem>>, vector<8x1088xf32>
    tpu.vector_store %arg11[%c64, %c0_95], %90 {strides = array<i32>} : memref<72x1088xf32, #tpu.memory_space<vmem>>, vector<8x1088xf32>,
    %c0_96 = arith.constant 0 : index
    %c0_97 = arith.constant 0 : index
    %92 = vector.load %arg5[%c0_96, %c0_97] : memref<4x72xf32, #tpu.memory_space<vmem>>, vector<4x72xf32>
    %c0_98 = arith.constant 0 : index
    %c0_99 = arith.constant 0 : index
    %93 = vector.load %arg11[%c0_98, %c0_99] : memref<72x1088xf32, #tpu.memory_space<vmem>>, vector<72x1088xf32>
    %cst_100 = arith.constant dense<0.000000e+00> : vector<4x1088xf32>
    %94 = tpu.matmul %92, %93, %cst_100 {dimension_numbers = #tpu.dot_dimension_numbers<[1], [0], [0], [1], [0, 0, 1, 1], [], []>} : vector<4x72xf32>, vector<72x1088xf32>, vector<4x1088xf32> -> vector<4x1088xf32>
    %c0_101 = arith.constant 0 : index
    %c0_102 = arith.constant 0 : index
    %95 = vector.load %arg6[%c0_101, %c0_102] : memref<4x1xf32, #tpu.memory_space<vmem>>, vector<4x1xf32>
    %96 = vector.broadcast %95 : vector<4x1xf32> to vector<4x1088xf32>
    %97 = arith.addf %94, %96 : vector<4x1088xf32>
    %cst_103 = arith.constant 0.000000e+00 : f32
    %98 = vector.broadcast %cst_103 : f32 to vector<4x1088xf32>
    %99 = arith.maximumf %97, %98 : vector<4x1088xf32>
    %c0_104 = arith.constant 0 : index
    %c0_105 = arith.constant 0 : index
    %c0_106 = arith.constant 0 : index
    %100 = vector.load %arg8[%c0_104, %c0_105, %c0_106] : memref<1x4x1088xf32, #tpu.memory_space<vmem>>, vector<1x4x1088xf32>
    %101 = vector.shape_cast %100 : vector<1x4x1088xf32> to vector<4x1088xf32>
    %102 = vector.shape_cast %99 : vector<4x1088xf32> to vector<1x4x1088xf32>
    tpu.vector_store %arg8[%c0_104, %c0_105, %c0_106], %102 {strides = array<i32>} : memref<1x4x1088xf32, #tpu.memory_space<vmem>>, vector<1x4x1088xf32>,
    return
  }
  func.func @transform_0(%arg0: i32) -> (i32, i32, i32) {
    %c0_i32 = arith.constant 0 : i32
    %c0_i32_0 = arith.constant 0 : i32
    %c0_i32_1 = arith.constant 0 : i32
    return %arg0, %c0_i32, %c0_i32_0 : i32, i32, i32
  }
  func.func @transform_1(%arg0: i32) -> (i32, i32) {
    %c0_i32 = arith.constant 0 : i32
    %c0_i32_0 = arith.constant 0 : i32
    %c0_i32_1 = arith.constant 0 : i32
    return %c0_i32, %c0_i32_0 : i32, i32
  }
  func.func @transform_2(%arg0: i32) -> (i32, i32) {
    %c0_i32 = arith.constant 0 : i32
    %c0_i32_0 = arith.constant 0 : i32
    %c0_i32_1 = arith.constant 0 : i32
    return %c0_i32, %c0_i32_0 : i32, i32
  }
  func.func @transform_3(%arg0: i32) -> (i32, i32) {
    %c0_i32 = arith.constant 0 : i32
    %c0_i32_0 = arith.constant 0 : i32
    %c0_i32_1 = arith.constant 0 : i32
    return %c0_i32, %c0_i32_0 : i32, i32
  }
  func.func @transform_4(%arg0: i32) -> (i32, i32) {
    %c0_i32 = arith.constant 0 : i32
    %c0_i32_0 = arith.constant 0 : i32
    %c0_i32_1 = arith.constant 0 : i32
    return %c0_i32, %c0_i32_0 : i32, i32
  }
  func.func @transform_5(%arg0: i32) -> (i32, i32) {
    %c0_i32 = arith.constant 0 : i32
    %c0_i32_0 = arith.constant 0 : i32
    %c0_i32_1 = arith.constant 0 : i32
    return %c0_i32, %c0_i32_0 : i32, i32
  }
  func.func @transform_6(%arg0: i32) -> (i32, i32) {
    %c0_i32 = arith.constant 0 : i32
    %c0_i32_0 = arith.constant 0 : i32
    %c0_i32_1 = arith.constant 0 : i32
    return %c0_i32, %c0_i32_0 : i32, i32
  }
  func.func @transform_7(%arg0: i32) -> (i32, i32, i32) {
    %c0_i32 = arith.constant 0 : i32
    %c0_i32_0 = arith.constant 0 : i32
    %c0_i32_1 = arith.constant 0 : i32
    return %arg0, %c0_i32, %c0_i32_0 : i32, i32, i32
  }
}

</mosaic_0001>

<bundles_post_ra>
// kernel: decoder_block_forward.1
= control target key start
LH: loop header
LB: loop body
LE: loop exit
PB: predicated region body
PF: predicated region fallthrough
CT: control target
= control target key end

     0   :  { %s3059_s24 = smov 0   ;;  %s3832_s0 = inlined_call_operand.vmem [shape: f32[2,64,16], index: 0, kind: input, shape index: {}]   ;;  %s3833_s1 = inlined_call_operand.vmem [shape: f32[16,68], index: 1, kind: input, shape index: {}]   ;;  %s3834_s2 = inlined_call_operand.vmem [shape: f32[8,36], index: 2, kind: input, shape index: {}]   ;;  %s3835_s3 = inlined_call_operand.vmem [shape: f32[8,1], index: 3, kind: input, shape index: {}]   ;;  %s3836_s4 = inlined_call_operand.vmem [shape: f32[4,72], index: 4, kind: input, shape index: {}]   ;;  %s3837_s5 = inlined_call_operand.vmem [shape: f32[4,1], index: 5, kind: input, shape index: {}]   ;;  %s3838_s6 = inlined_call_operand.vmem [shape: f32[1,1088], index: 6, kind: input, shape index: {}]   ;;  %s3839_s7 = inlined_call_operand.vmem [shape: f32[2,4,1088], index: 7, kind: output, shape index: {}]  }
   0x1 LB: > { %s2703_s25 = sadd.s32 4294967295, %s2990_s24   ;;  %p2707_p0 = scmp.ge.s32.totalorder %s2990_s24, 1  ;;  %s2990_s24 = sphi %s3059_s24, %s17_s24  }
   0x2   : > { %p237_p1 = scmp.lt.s32.totalorder %s2990_s24, 3 }
   0x4   : > { %p238_p2 = pnand %p2707_p0, %p237_p1 }
   0x5   : > { %v299_v0 = vld [vmem:[%s3833_s1] sm:$0xff] (!%p238_p2)  ;;  %v300_v1 = vld [vmem:[%s3833_s1 + $0x8] sm:$0xff] (!%p238_p2)  ;;  %p269_p3 = scmp.lt.s32.totalorder (!%p238_p2), %s2703_s25, 1  ;;  %vm301_vm0 = vcmask (!%p238_p2), 130048   ;;  %vm279_vm1 = vcmask (!%p238_p2), 273408   ;;  %v2992_v11 = vmov (!%p238_p2), 0.0  }
   0x6   : > { %241 = sbr.rel (%p238_p2) target bundleno = 1391 (0x56f), region = 48  ;;  %v2818_v2 = vpack.c.bf16 (!%p238_p2), %v300_v1, %v299_v0  ;;  %280 = vst.msk [vmem:[#allocation2] sm:$0xf] (!%p238_p2), %vm279_vm1, %v2992_v11  ;;  %1300 = vmatprep.mubr.f32.mxu0 (!%p238_p2), %v2992_v11  ;;  %s2993_s11 = smov (!%p238_p2), 42   ;;  %vm281_vm2 = vcmask (!%p238_p2), 1044240   ;;  %vm282_vm3 = vcmask (!%p238_p2), 310276  }
   0x7   : > { %s2994_s12 = smov (!%p238_p2), 34   ;;  %s2995_s13 = smov (!%p238_p2), 110   ;;  %vm283_vm4 = vmor (!%p238_p2), %vm282_vm3, %vm281_vm2  ;;  %vm435_vm5 = vcmask (!%p238_p2), 830736   ;;  %vm444_vm6 = vcmask (!%p238_p2), 1044272   ;;  %vm445_vm7 = vcmask (!%p238_p2), 343044   ;;  %vm441_vm8 = vcmask (!%p238_p2), 834560  }
   0x8   : > { %2819 = vmatprep.subr.bf16.mxu1 (!%p238_p2), %v2818_v2  ;;  %s2996_s14 = smov (!%p238_p2), 102   ;;  %s2997_s15 = smov (!%p238_p2), 50   ;;  %284 = vst.msk [vmem:[#allocation2 + $0x20] sm:$0xff] (!%p238_p2), %vm283_vm4, %v2992_v11  ;;  %vm461_vm9 = vcmask (!%p238_p2), 1044336   ;;  %vm462_vm10 = vcmask (!%p238_p2), 408580   ;;  %vm446_vm11 = vmor (!%p238_p2), %vm445_vm7, %vm444_vm6  ;;  %vm458_vm12 = vcmask (!%p238_p2), 900096  }
   0x9   : > { %2821 = vmatpush3.bf16.msra.mxu1 (!%p238_p2), %v2818_v2  ;;  %s2998_s16 = smov (!%p238_p2), 58   ;;  %s2999_s17 = smov (!%p238_p2), 74   ;;  %vm452_vm13 = vcmask (!%p238_p2), 896336   ;;  %vm463_vm14 = vmor (!%p238_p2), %vm462_vm10, %vm461_vm9  ;;  %vm469_vm15 = vcmask (!%p238_p2), 961936   ;;  %vm479_vm1 = vcmask (!%p238_p2), 474116   ;;  %vm492_vm2 = vcmask (!%p238_p2), 1031168  }
   0xa   : > { %s3000_s18 = smov (!%p238_p2), 126   ;;  %s3001_s19 = smov (!%p238_p2), 66   ;;  %vm475_vm3 = vcmask (!%p238_p2), 965632   ;;  %vm495_vm4 = vcmask (!%p238_p2), 1044464   ;;  %vm503_vm7 = vcmask (!%p238_p2), 539648   ;;  %vm507_vm9 = vcmask (!%p238_p2), 48132  }
   0xb   : > { %s3002_s20 = smov (!%p238_p2), 118   ;;  %s3003_s21 = smov (!%p238_p2), 90   ;;  %vm486_vm10 = vcmask (!%p238_p2), 1027536  }
   0xc   : > { %s3004_s22 = smov (!%p238_p2), 14   ;;  %s3005_s23 = smov (!%p238_p2), 82  }
   0xd   : > { %s3841_s25 = smov (!%p269_p3, %s2703_s25), 1  ;;  %s3006_s26 = smov 6  }
   0xe   : > { %s2741_s30 = sshll.u32 %s3841_s25, 6  ;;  %s3007_s27 = smov 30  }
   0xf   : > { %s273_s10 = scalar_lea.vmem %s3832_s0, %s2741_s30  ;;  %s3008_s28 = smov 22  }
  0x10   : > { %v291_v3 = vld [vmem:[%s273_s10] sm:$0xff]  ;;  %v292_v4 = vld [vmem:[%s273_s10 + $0x8] sm:$0xff]  ;;  %v293_v5 = vld [vmem:[%s273_s10 + $0x10] sm:$0xff]  ;;  %s3009_s29 = smov 127   ;;  %s3010_s30 = smov 92  }
  0x11   : > { %2772 = vmatprep.mubr.msk.f32.mxu1 %vm301_vm0, %v291_v3  ;;  %v294_v6 = vld [vmem:[%s273_s10 + $0x18] sm:$0xff]  ;;  %v295_v7 = vld [vmem:[%s273_s10 + $0x20] sm:$0xff]  ;;  %v296_v8 = vld [vmem:[%s273_s10 + $0x28] sm:$0xff]  ;;  %s3011_s8 = smov 94   ;;  %s3012_s9 = smov 59  }
  0x12   : > { %2773 = vmatmul.mubr.msk.f32.vlgmr.msra.gmra.mrb[0].mxu1 %vm301_vm0, %v292_v4  ;;  %v297_v9 = vld [vmem:[%s273_s10 + $0x30] sm:$0xff]  ;;  %v298_v10 = vld [vmem:[%s273_s10 + $0x38] sm:$0xff]  ;;  %s3013_s10 = smov 93  }
  0x13   : > { %2775 = vmatprep.mubr.msk.f32.mxu1 %vm301_vm0, %v293_v5 }
  0x16   : > { %2776 = vmatmul.mubr.msk.f32.gmra.mrb[2].mxu1 %vm301_vm0, %v294_v6 }
  0x17   : > { %2778 = vmatprep.mubr.msk.f32.mxu1 %vm301_vm0, %v295_v7 }
  0x1a   : > { %2779 = vmatmul.mubr.msk.f32.gmra.mrb[4].mxu1 %vm301_vm0, %v296_v8 }
  0x1b   : > { %2781 = vmatprep.mubr.msk.f32.mxu1 %vm301_vm0, %v297_v9 }
  0x1e   : > { %2782 = vmatmul.mubr.msk.f32.gmra.mrb[6].mxu1 %vm301_vm0, %v298_v10  ;;  %vm478_vm0 = vcmask 1044400  }
  0x1f   : > { %1229 = vmatprep.mubr.f32.mxu1 %v2992_v11  ;;  %vm480_vm6 = vmor %vm479_vm1, %vm478_vm0  ;;  %vm514_vm0 = vcmask 601136   ;;  %vm540_vm1 = vcmask 1044112  }
  0xe5   : > { %v2774_v12 = vpop.f32.mrb[0].mxu1 }
  0xe6   : > { %449 = vrot.lane.b32.xlu1 %v2774_v12, %s2993_s11  ;;  %v392_v13 = vpop.f32.mrb[1].mxu1  ;;  %v454_v14 = vcombine.high %v2774_v12, %v2774_v12  ;;  %s3014_s11 = smov 60  }
  0xe7   : > { %432 = vrot.lane.b32.xlu0 %v392_v13, %s2994_s12  ;;  %v437_v15 = vcombine.high %v392_v13, %v392_v13 }
  0xe9   : > { %v2777_v16 = vpop.f32.mrb[2].mxu1 }
  0xea   : > { %455 = vrot.lane.b32.xlu1 %v454_v14, %s2995_s13  ;;  %v402_v17 = vpop.f32.mrb[3].mxu1  ;;  %v488_v20 = vcombine.high %v2777_v16, %v2777_v16 }
  0xeb   : > { %438 = vrot.lane.b32.xlu0 %v437_v15, %s2996_s14  ;;  %v471_v23 = vcombine.high %v402_v17, %v402_v17 }
  0xed   : > { %v2780_v18 = vpop.f32.mrb[4].mxu1 }
  0xee   : > { %466 = vrot.lane.b32.xlu1 %v402_v17, %s2997_s15  ;;  %v412_v19 = vpop.f32.mrb[5].mxu1  ;;  %v527_v24 = vcombine.high %v2780_v18, %v2780_v18 }
  0xef   : > { %483 = vrot.lane.b32.xlu0 %v2777_v16, %s2998_s16  ;;  %v510_v25 = vcombine.high %v412_v19, %v412_v19 }
  0xf1   : > { %v2783_v21 = vpop.f32.mrb[6].mxu1 }
  0xf2   : > { %517 = vrot.lane.b32.xlu1 %v2780_v18, %s2999_s17  ;;  %v422_v22 = vpop.f32.mrb[7].mxu1  ;;  %v561_v26 = vcombine.high %v2783_v21, %v2783_v21 }
  0xf3   : > { %489 = vrot.lane.b32.xlu0 %v488_v20, %s3000_s18  ;;  %v544_v27 = vcombine.high %v422_v22, %v422_v22 }
  0xf6   : > { %500 = vrot.lane.b32.xlu1 %v412_v19, %s3001_s19 }
  0xf7   : > { %472 = vrot.lane.b32.xlu0 %v471_v23, %s3002_s20  ;;  %s3018_s20 = smov 35  }
  0xfa   : > { %551 = vrot.lane.b32.xlu1 %v2783_v21, %s3003_s21 }
  0xfb   : > { %528 = vrot.lane.b32.xlu0 %v527_v24, %s3004_s22 }
  0xfe   : > { %534 = vrot.lane.b32.xlu1 %v422_v22, %s3005_s23 }
  0xff   : > { %511 = vrot.lane.b32.xlu0 %v510_v25, %s3006_s26 }
 0x102   : > { %562 = vrot.lane.b32.xlu1 %v561_v26, %s3007_s27  ;;  %s2936_s27 = smul.u32 36, %s3841_s25 }
 0x103   : > { %545 = vrot.lane.b32.xlu0 %v544_v27, %s3008_s28 }
 0x158   : > { %v450_v28 = vpop.permute.xlu1 %449 }
 0x159   : > { %v433_v29 = vpop.permute.xlu0 %432 }
 0x15a   : > { %436 = vst.msk [vmem:[#allocation2] sm:$0xf] %vm435_vm5, %v433_v29  ;;  %vm496_vm5 = vcmask 539652  }
 0x15c   : > { %v456_v30 = vpop.permute.xlu1 %455 }
 0x15d   : > { %v439_v31 = vpop.permute.xlu0 %438  ;;  %v457_v32 = vrot.slane %v456_v30, 4 }
 0x15e   : > { %v440_v33 = vrot.slane %v439_v31, 4 }
 0x15f   : > { %v459_v37 = vsel %vm458_vm12, %v457_v32, %v456_v30  ;;  %vm520_vm12 = vcmask 605184  }
 0x160   : > { %v442_v34 = vsel %vm441_vm8, %v440_v33, %v439_v31  ;;  %v467_v35 = vpop.permute.xlu1 %466  ;;  %vm506_vm8 = vcmask 1043984  }
 0x161   : > { %447 = vst.msk [vmem:[#allocation2] sm:$0xff] %vm446_vm11, %v442_v34  ;;  %v484_v36 = vpop.permute.xlu0 %483  ;;  %vm497_vm11 = vmor %vm496_vm5, %vm495_vm4  ;;  %vm531_vm5 = vcmask 666736  }
 0x162   : > { %453 = vst.msk [vmem:[#allocation2 + $0x4] sm:$0xf] %vm452_vm13, %v450_v28  ;;  %vm508_vm13 = vmor %vm507_vm9, %vm506_vm8  ;;  %vm557_vm8 = vcmask 1044176   ;;  %vm558_vm9 = vcmask 244740  }
 0x163   : > { %464 = vst.msk [vmem:[#allocation2 + $0x4] sm:$0xff] %vm463_vm14, %v459_v37  ;;  %vm523_vm14 = vcmask 1044048  }
 0x164   : > { %470 = vst.msk [vmem:[#allocation2 + $0x8] sm:$0xf] %vm469_vm15, %v467_v35  ;;  %v518_v38 = vpop.permute.xlu1 %517  ;;  %vm524_vm15 = vcmask 113668  }
 0x165   : > { %v490_v39 = vpop.permute.xlu0 %489  ;;  %v519_v49 = vrot.slane %v518_v38, 4  ;;  %vm525_vm4 = vmor %vm524_vm15, %vm523_vm14  ;;  %vm592_vm14 = vcmask 519168   ;;  %vm627_vm15 = vcmask 1039360  }
 0x166   : > { %v491_v40 = vrot.slane %v490_v39, 4 }
 0x167   : > { %v521_v53 = vsel %vm520_vm12, %v519_v49, %v518_v38  ;;  %vm559_vm12 = vmor %vm558_vm9, %vm557_vm8  ;;  %vm1133_vm8 = vcmask 293888   ;;  %vm653_vm9 = vcmask 523268  }
 0x168   : > { %v501_v41 = vpop.permute.xlu1 %500  ;;  %v493_v47 = vsel %vm492_vm2, %v491_v40, %v490_v39 }
 0x169   : > { %v473_v42 = vpop.permute.xlu0 %472  ;;  %v502_v43 = vrot.slane %v501_v41, 4 }
 0x16a   : > { %v3093_v44 = vld [vmem:[#allocation2] sm:$0xff]  ;;  %v474_v45 = vrot.slane %v473_v42, 4 }
 0x16b   : > { %584 = vst [vmem:[#allocation4] sm:$0xf] %v3093_v44  ;;  %v3098_v46 = vcombine.high %v3093_v44, %v3093_v44  ;;  %669 = vrot.lane.b32.xlu1 %v3093_v44, %s3000_s18  ;;  %611 = vrot.lane.b32.xlu0 %v3093_v44, %s3009_s29  ;;  %v504_v52 = vsel %vm503_vm7, %v502_v43, %v501_v41  ;;  %vm554_vm7 = vcmask 736256  }
 0x16c   : > { %v476_v48 = vsel %vm475_vm3, %v474_v45, %v473_v42  ;;  %v552_v50 = vpop.permute.xlu1 %551  ;;  %vm541_vm3 = vcmask 179204   ;;  %v604_v60 = vcombine.low %v3093_v44, %v3093_v44 }
 0x16d   : > { %481 = vst.msk [vmem:[#allocation2 + $0x8] sm:$0xff] %vm480_vm6, %v476_v48  ;;  %v529_v51 = vpop.permute.xlu0 %528  ;;  %585 = vst [vmem:[#allocation4 + $0x8] sm:$0xf] %v3098_v46  ;;  %v553_v54 = vrot.slane %v552_v50, 4  ;;  %vm537_vm6 = vcmask 670720  }
 0x16e   : > { %487 = vst.msk [vmem:[#allocation2 + $0xc] sm:$0xf] %vm486_vm10, %v484_v36  ;;  %vm542_vm10 = vmor %vm541_vm3, %vm540_vm1  ;;  %vm865_vm1 = vcmask 752640   ;;  %vm805_vm3 = vcmask 760832  }
 0x16f   : > { %498 = vst.msk [vmem:[#allocation2 + $0xc] sm:$0xff] %vm497_vm11, %v493_v47  ;;  %849 = vrot.lane.b32.xlu1 %v3093_v44, %s3010_s30  ;;  %730 = vrot.lane.b32.xlu0 %v3093_v44, %s3011_s8  ;;  %vm548_vm11 = vcmask 732336   ;;  %v555_v59 = vsel %vm554_vm7, %v553_v54, %v552_v50  ;;  %v3015_v47 = vmov 0   ;;  %vm1137_vm7 = vcmask 1043456  }
 0x170   : > { %509 = vst.msk [vmem:[#allocation2 + $0x10] sm:$0xff] %vm508_vm13, %v504_v52  ;;  %v535_v55 = vpop.permute.xlu1 %534  ;;  %vm565_vm13 = vcmask 797936   ;;  %2972 = vset.pattern.permute.xlu1 %v3015_v47  ;;  %2973 = vset.pattern.permute.xlu0 %v3015_v47 }
 0x171   : > { %v512_v56 = vpop.permute.xlu0 %511  ;;  %v536_v57 = vrot.slane %v535_v55, 4 }
 0x172   : > { %515 = vst.msk [vmem:[#allocation2 + $0x14] sm:$0xf] %vm514_vm0, %v512_v56  ;;  %vm746_vm0 = vcmask 769024  }
 0x173   : > { %972 = vrot.lane.b32.xlu1 %v3093_v44, %s3012_s9  ;;  %671 = vrot.lane.b32.xlu0 %v3098_v46, %s3000_s18  ;;  %526 = vst.msk [vmem:[#allocation2 + $0x14] sm:$0xff] %vm525_vm4, %v521_v53  ;;  %v538_v58 = vsel %vm537_vm6, %v536_v57, %v535_v55  ;;  %vm990_vm4 = vcmask 482304   ;;  %vm1053_vm6 = vcmask 474112  }
 0x174   : > { %532 = vst.msk [vmem:[#allocation2 + $0x18] sm:$0xf] %vm531_vm5, %v529_v51  ;;  %v563_v62 = vpop.permute.xlu1 %562  ;;  %vm927_vm5 = vcmask 490496  }
 0x175   : > { %543 = vst.msk [vmem:[#allocation2 + $0x18] sm:$0xff] %vm542_vm10, %v538_v58  ;;  %v546_v61 = vpop.permute.xlu0 %545  ;;  %vm3017_vm10 = vmmov 0  }
 0x176   : > { %v774_v63 = vld [vmem:[#allocation2 + $0x8] sm:$0xff]  ;;  %549 = vst.msk [vmem:[#allocation2 + $0x1c] sm:$0xf] %vm548_vm11, %v546_v61  ;;  %vm285_vm11 = vcmask 556032  }
 0x177   : > { %787 = vrot.lane.b32.xlu1 %v3093_v44, %s3013_s10  ;;  %609 = vrot.lane.b32.xlu0 %v604_v60, %s3009_s29  ;;  %v784_v0 = vcombine.high %v774_v63, %v774_v63  ;;  %560 = vst.msk [vmem:[#allocation2 + $0x1c] sm:$0xff] %vm559_vm12, %v555_v59  ;;  %586 = vst [vmem:[#allocation4 + $0x10] sm:$0xf] %v774_v63  ;;  %v605_v6 = vcombine.low %v774_v63, %v774_v63  ;;  %vm287_vm12 = vcmask 1048336  }
 0x178   : > { %566 = vst.msk [vmem:[#allocation2 + $0x20] sm:$0xf] %vm565_vm13, %v563_v62  ;;  %vm1631_vm13 = vcmask 1047832  }
 0x179   : > { %587 = vst [vmem:[#allocation4 + $0x18] sm:$0xf] %v784_v0  ;;  %286 = vst.msk [vmem:[#allocation3] sm:$0xff] %vm285_vm11, %v2992_v11  ;;  %vm1659_vm11 = vcmask 523264  }
 0x17a   : > { %v569_v1 = vld [vmem:[#allocation2 + $0x10] sm:$0xff]  ;;  %288 = vst.msk [vmem:[#allocation3 + $0x40] sm:$0xff] %vm287_vm12, %v2992_v11  ;;  %vm2260_vm12 = vcmask 588800  }
 0x17b   : > { %907 = vrot.lane.b32.xlu1 %v3093_v44, %s3014_s11  ;;  %728 = vrot.lane.b32.xlu0 %v604_v60, %s3011_s8  ;;  %v3131_v2 = vcombine.high %v569_v1, %v569_v1  ;;  %588 = vst [vmem:[#allocation4 + $0x20] sm:$0xf] %v569_v1  ;;  %v606_v7 = vcombine.low %v569_v1, %v569_v1 }
 0x17d   : > { %589 = vst [vmem:[#allocation4 + $0x28] sm:$0xf] %v3131_v2 }
 0x17e   : > { %v3134_v3 = vld [vmem:[#allocation2 + $0x18] sm:$0xff] }
 0x17f   : > { %1033 = vrot.lane.b32.xlu1 %v3093_v44, %s2998_s16  ;;  %847 = vrot.lane.b32.xlu0 %v604_v60, %s3010_s30  ;;  %590 = vst [vmem:[#allocation4 + $0x30] sm:$0xf] %v3134_v3  ;;  %v3142_v4 = vcombine.high %v3134_v3, %v3134_v3  ;;  %v571_v5 = vld [vmem:[#allocation2 + $0x20] sm:$0xf]  ;;  %v607_v12 = vcombine.low %v3134_v3, %v3134_v3 }
 0x180   : > { %593 = vst.msk [vmem:[#allocation4 + $0x40] sm:$0xf] %vm592_vm14, %v571_v5  ;;  %v659_v8 = vld [vmem:[#allocation2 + $0x20] sm:$0xf] }
 0x181   : > { %591 = vst [vmem:[#allocation4 + $0x38] sm:$0xf] %v3142_v4  ;;  %v777_v9 = vld [vmem:[#allocation2 + $0x20] sm:$0xf] }
 0x182   : > { %v3191_v10 = vld [vmem:[#allocation2 + $0x20] sm:$0xff] }
 0x183   : > { %789 = vrot.lane.b32.xlu1 %v3098_v46, %s3013_s10  ;;  %970 = vrot.lane.b32.xlu0 %v604_v60, %s3012_s9  ;;  %v2980_v17 = vld [vmem:[#allocation2 + $0x20] ss:$0 sps:$4 sm:$0xff]   ;;  %v969_v28 = vcombine.low %v3191_v10, %v3191_v10  ;;  %v906_v37 = vcombine.high %v3191_v10, %v3191_v10 }
 0x184   : > { %v2981_v20 = vld [vmem:[#allocation2 + $0x20] ss:$0 sps:$4 sm:$0xff]  }
 0x185   : > { %v2982_v24 = vld [vmem:[#allocation2 + $0x20] ss:$0 sps:$4 sm:$0xff]  }
 0x187   : > { %909 = vrot.lane.b32.xlu1 %v3098_v46, %s3014_s11  ;;  %791 = vrot.lane.b32.xlu0 %v774_v63, %s3013_s10 }
 0x18b   : > { %1035 = vrot.lane.b32.xlu1 %v3098_v46, %s2998_s16  ;;  %911 = vrot.lane.b32.xlu0 %v774_v63, %s3014_s11  ;;  %v1127_v46 = vld [vmem:[%s3835_s3] sm:$0xff] }
 0x18f   : > { %673 = vrot.lane.b32.xlu1 %v774_v63, %s3000_s18  ;;  %1037 = vrot.lane.b32.xlu0 %v774_v63, %s2998_s16 }
 0x193   : > { %615 = vrot.lane.b32.xlu1 %v774_v63, %s3009_s29  ;;  %675 = vrot.lane.b32.xlu0 %v784_v0, %s3000_s18 }
 0x197   : > { %734 = vrot.lane.b32.xlu1 %v774_v63, %s3011_s8  ;;  %851 = vrot.lane.b32.xlu0 %v605_v6, %s3010_s30 }
 0x19b   : > { %853 = vrot.lane.b32.xlu1 %v774_v63, %s3010_s30  ;;  %974 = vrot.lane.b32.xlu0 %v605_v6, %s3012_s9 }
 0x19f   : > { %976 = vrot.lane.b32.xlu1 %v774_v63, %s3012_s9  ;;  %793 = vrot.lane.b32.xlu0 %v784_v0, %s3013_s10 }
 0x1a3   : > { %613 = vrot.lane.b32.xlu1 %v605_v6, %s3009_s29  ;;  %913 = vrot.lane.b32.xlu0 %v784_v0, %s3014_s11 }
 0x1a7   : > { %732 = vrot.lane.b32.xlu1 %v605_v6, %s3011_s8  ;;  %1039 = vrot.lane.b32.xlu0 %v784_v0, %s2998_s16 }
 0x1ab   : > { %677 = vrot.lane.b32.xlu1 %v569_v1, %s3000_s18  ;;  %619 = vrot.lane.b32.xlu0 %v569_v1, %s3009_s29 }
 0x1af   : > { %795 = vrot.lane.b32.xlu1 %v569_v1, %s3013_s10  ;;  %738 = vrot.lane.b32.xlu0 %v569_v1, %s3011_s8 }
 0x1b3   : > { %915 = vrot.lane.b32.xlu1 %v569_v1, %s3014_s11  ;;  %857 = vrot.lane.b32.xlu0 %v569_v1, %s3010_s30 }
 0x1b7   : > { %1041 = vrot.lane.b32.xlu1 %v569_v1, %s2998_s16  ;;  %980 = vrot.lane.b32.xlu0 %v569_v1, %s3012_s9 }
 0x1bb   : > { %617 = vrot.lane.b32.xlu0 %v606_v7, %s3009_s29  ;;  %681 = vrot.lane.b32.xlu1 %v3134_v3, %s3000_s18 }
 0x1bf   : > { %736 = vrot.lane.b32.xlu0 %v606_v7, %s3011_s8  ;;  %799 = vrot.lane.b32.xlu1 %v3134_v3, %s3013_s10 }
 0x1c3   : > { %855 = vrot.lane.b32.xlu0 %v606_v7, %s3010_s30  ;;  %919 = vrot.lane.b32.xlu1 %v3134_v3, %s3014_s11 }
 0x1c7   : > { %978 = vrot.lane.b32.xlu0 %v606_v7, %s3012_s9  ;;  %685 = vrot.lane.b32.xlu1 %v659_v8, %s3000_s18 }
 0x1cb   : > { %679 = vrot.lane.b32.xlu0 %v3131_v2, %s3000_s18  ;;  %803 = vrot.lane.b32.xlu1 %v777_v9, %s3013_s10 }
 0x1cf   : > { %797 = vrot.lane.b32.xlu0 %v3131_v2, %s3013_s10  ;;  %923 = vrot.lane.b32.xlu1 %v3191_v10, %s3014_s11 }
 0x1d3   : > { %917 = vrot.lane.b32.xlu0 %v3131_v2, %s3014_s11  ;;  %621 = vrot.lane.b32.xlu1 %v607_v12, %s3009_s29 }
 0x1d7   : > { %623 = vrot.lane.b32.xlu0 %v3134_v3, %s3009_s29  ;;  %740 = vrot.lane.b32.xlu1 %v607_v12, %s3011_s8 }
 0x1db   : > { %742 = vrot.lane.b32.xlu0 %v3134_v3, %s3011_s8  ;;  %859 = vrot.lane.b32.xlu1 %v607_v12, %s3010_s30 }
 0x1dd   : > { %v670_v13 = vpop.permute.xlu1 %669  ;;  %v3208_v14 = vpop.permute.xlu0 %611 }
 0x1df   : > { %861 = vrot.lane.b32.xlu0 %v3134_v3, %s3010_s30  ;;  %982 = vrot.lane.b32.xlu1 %v607_v12, %s3012_s9 }
 0x1e1   : > { %v3213_v15 = vpop.permute.xlu1 %849  ;;  %v3215_v16 = vpop.permute.xlu0 %730 }
 0x1e3   : > { %984 = vrot.lane.b32.xlu0 %v3134_v3, %s3012_s9  ;;  %625 = vrot.lane.b32.xlu1 %v2980_v17, %s3009_s29 }
 0x1e5   : > { %v3220_v18 = vpop.permute.xlu1 %972  ;;  %v3222_v19 = vpop.permute.xlu0 %671 }
 0x1e6   : > { %v687_v21 = vsel %vm492_vm2, %v670_v13, %v3222_v19 }
 0x1e7   : > { %704 = vst [vmem:[#allocation4 + $0x48] sm:$0xf] %v687_v21  ;;  %683 = vrot.lane.b32.xlu0 %v3142_v4, %s3000_s18  ;;  %744 = vrot.lane.b32.xlu1 %v2981_v20, %s3011_s8 }
 0x1e9   : > { %v788_v22 = vpop.permute.xlu1 %787  ;;  %v610_v23 = vpop.permute.xlu0 %609 }
 0x1ea   : > { %v628_v25 = vsel %vm627_vm15, %v610_v23, %v3208_v14 }
 0x1eb   : > { %645 = vst [vmem:[#allocation4] sm:$0xf0] %v628_v25  ;;  %801 = vrot.lane.b32.xlu0 %v3142_v4, %s3013_s10  ;;  %863 = vrot.lane.b32.xlu1 %v2982_v24, %s3010_s30 }
 0x1ed   : > { %v908_v26 = vpop.permute.xlu1 %907  ;;  %v729_v27 = vpop.permute.xlu0 %728 }
 0x1ee   : > { %v747_v29 = vsel %vm746_vm0, %v729_v27, %v3215_v16 }
 0x1ef   : > { %764 = vst [vmem:[#allocation4 + $0x48] sm:$0xf0] %v747_v29  ;;  %921 = vrot.lane.b32.xlu0 %v3142_v4, %s3014_s11  ;;  %986 = vrot.lane.b32.xlu1 %v969_v28, %s3012_s9 }
 0x1f1   : > { %v1034_v30 = vpop.permute.xlu1 %1033  ;;  %v848_v31 = vpop.permute.xlu0 %847 }
 0x1f2   : > { %v866_v32 = vsel %vm865_vm1, %v848_v31, %v3213_v15  ;;  %v1082_v24 = vld [vmem:[#allocation4] sm:$0xff] }
 0x1f3   : > { %883 = vst [vmem:[#allocation4 + $0x90] sm:$0xf0] %v866_v32  ;;  %1043 = vrot.lane.b32.xlu0 %v3131_v2, %s2998_s16  ;;  %1045 = vrot.lane.b32.xlu1 %v3134_v3, %s2998_s16 }
 0x1f5   : > { %v790_v33 = vpop.permute.xlu1 %789  ;;  %v971_v34 = vpop.permute.xlu0 %970 }
 0x1f6   : > { %v806_v35 = vsel %vm805_vm3, %v788_v22, %v790_v33  ;;  %v991_v36 = vsel %vm990_vm4, %v971_v34, %v3220_v18 }
 0x1f7   : > { %823 = vst [vmem:[#allocation4 + $0x90] sm:$0xf] %v806_v35  ;;  %1009 = vst [vmem:[#allocation4 + $0xd8] sm:$0xf0] %v991_v36  ;;  %1047 = vrot.lane.b32.xlu0 %v3142_v4, %s2998_s16  ;;  %1049 = vrot.lane.b32.xlu1 %v3191_v10, %s2998_s16 }
 0x1f9   : > { %v910_v38 = vpop.permute.xlu1 %909  ;;  %v792_v39 = vpop.permute.xlu0 %791 }
 0x1fa   : > { %v928_v40 = vsel %vm927_vm5, %v908_v26, %v910_v38  ;;  %v807_v41 = vsel %vm805_vm3, %v790_v33, %v792_v39 }
 0x1fb   : > { %946 = vst [vmem:[#allocation4 + $0xd8] sm:$0xf] %v928_v40  ;;  %824 = vst [vmem:[#allocation4 + $0x98] sm:$0xf] %v807_v41  ;;  %925 = vrot.lane.b32.xlu0 %v906_v37, %s3014_s11  ;;  %988 = vrot.lane.b32.xlu1 %v3191_v10, %s3012_s9 }
 0x1fd   : > { %v1036_v42 = vpop.permute.xlu1 %1035  ;;  %v912_v43 = vpop.permute.xlu0 %911 }
 0x1fe   : > { %v1054_v44 = vsel %vm1053_vm6, %v1034_v30, %v1036_v42  ;;  %v929_v45 = vsel %vm927_vm5, %v910_v38, %v912_v43  ;;  %v1100_v32 = vld [vmem:[#allocation4 + $0x90] sm:$0xff]  ;;  %v3326_v38 = vld [vmem:[%s3834_s2] sm:$0xff] }
 0x1ff   : > { %1072 = vst [vmem:[#allocation4 + $0x120] sm:$0xf] %v1054_v44  ;;  %947 = vst [vmem:[#allocation4 + $0xe0] sm:$0xf] %v929_v45  ;;  %1051 = vrot.lane.b32.xlu0 %v906_v37, %s2998_s16  ;;  %1130 = vperm.xlu1 %2972, %v1127_v46  }
 0x201   : > { %v674_v48 = vpop.permute.xlu1 %673  ;;  %v1038_v49 = vpop.permute.xlu0 %1037 }
 0x202   : > { %v688_v50 = vsel %vm492_vm2, %v3222_v19, %v674_v48  ;;  %v1055_v51 = vsel %vm1053_vm6, %v1036_v42, %v1038_v49  ;;  %v1109_v30 = vld [vmem:[#allocation4 + $0xd8] sm:$0xff] }
 0x203   : > { %705 = vst [vmem:[#allocation4 + $0x50] sm:$0xf] %v688_v50  ;;  %1073 = vst [vmem:[#allocation4 + $0x128] sm:$0xf] %v1055_v51  ;;  %v2828_v33 = vpack.c.bf16 %v1109_v30, %v1100_v32 }
 0x205   : > { %v3270_v52 = vpop.permute.xlu1 %615  ;;  %v676_v53 = vpop.permute.xlu0 %675 }
 0x206   : > { %v689_v54 = vsel %vm492_vm2, %v674_v48, %v676_v53  ;;  %v1118_v41 = vld [vmem:[#allocation4 + $0x120] sm:$0xf] }
 0x207   : > { %706 = vst [vmem:[#allocation4 + $0x58] sm:$0xf] %v689_v54 }
 0x209   : > { %v3273_v55 = vpop.permute.xlu1 %734  ;;  %v852_v56 = vpop.permute.xlu0 %851 }
 0x20a   : > { %v867_v57 = vsel %vm865_vm1, %v3213_v15, %v852_v56  ;;  %v1119_v37 = vld [vmem:[#allocation4 + $0x128] sm:$0xf] }
 0x20b   : > { %884 = vst [vmem:[#allocation4 + $0x98] sm:$0xf0] %v867_v57 }
 0x20d   : > { %v3277_v58 = vpop.permute.xlu1 %853  ;;  %v975_v59 = vpop.permute.xlu0 %974 }
 0x20e   : > { %v868_v60 = vsel %vm865_vm1, %v852_v56, %v3277_v58  ;;  %v992_v61 = vsel %vm990_vm4, %v3220_v18, %v975_v59 }
 0x20f   : > { %885 = vst [vmem:[#allocation4 + $0xa0] sm:$0xf0] %v868_v60  ;;  %1010 = vst [vmem:[#allocation4 + $0xe0] sm:$0xf0] %v992_v61 }
 0x211   : > { %v3283_v62 = vpop.permute.xlu1 %976  ;;  %v794_v63 = vpop.permute.xlu0 %793 }
 0x212   : > { %v993_v0 = vsel %vm990_vm4, %v975_v59, %v3283_v62  ;;  %v808_v1 = vsel %vm805_vm3, %v792_v39, %v794_v63  ;;  %v1101_v26 = vld [vmem:[#allocation4 + $0x98] sm:$0xff] }
 0x213   : > { %1011 = vst [vmem:[#allocation4 + $0xe8] sm:$0xf0] %v993_v0  ;;  %825 = vst [vmem:[#allocation4 + $0xa0] sm:$0xf] %v808_v1 }
 0x215   : > { %v614_v2 = vpop.permute.xlu1 %613  ;;  %v914_v3 = vpop.permute.xlu0 %913 }
 0x216   : > { %v629_v4 = vsel %vm627_vm15, %v3208_v14, %v614_v2  ;;  %v630_v5 = vsel %vm627_vm15, %v614_v2, %v3270_v52  ;;  %v930_v6 = vsel %vm927_vm5, %v912_v43, %v914_v3  ;;  %v1110_v22 = vld [vmem:[#allocation4 + $0xe0] sm:$0xff] }
 0x217   : > { %646 = vst [vmem:[#allocation4 + $0x8] sm:$0xf0] %v629_v4  ;;  %647 = vst [vmem:[#allocation4 + $0x10] sm:$0xf0] %v630_v5  ;;  %v2826_v29 = vpack.c.bf16 %v1110_v22, %v1101_v26 }
 0x218   : > { %948 = vst [vmem:[#allocation4 + $0xe8] sm:$0xf] %v930_v6 }
 0x219   : > { %v733_v7 = vpop.permute.xlu1 %732  ;;  %v1040_v8 = vpop.permute.xlu0 %1039 }
 0x21a   : > { %v748_v9 = vsel %vm746_vm0, %v3215_v16, %v733_v7  ;;  %v749_v10 = vsel %vm746_vm0, %v733_v7, %v3273_v55  ;;  %v1056_v12 = vsel %vm1053_vm6, %v1038_v49, %v1040_v8  ;;  %v1091_v16 = vld [vmem:[#allocation4 + $0x48] sm:$0xff] }
 0x21b   : > { %765 = vst [vmem:[#allocation4 + $0x50] sm:$0xf0] %v748_v9  ;;  %766 = vst [vmem:[#allocation4 + $0x58] sm:$0xf0] %v749_v10  ;;  %v2824_v25 = vpack.c.bf16 %v1091_v16, %v1082_v24  ;;  %v1102_v10 = vld [vmem:[#allocation4 + $0xa0] sm:$0xff] }
 0x21c   : > { %1074 = vst [vmem:[#allocation4 + $0x130] sm:$0xf] %v1056_v12 }
 0x21d   : > { %v3298_v13 = vpop.permute.xlu1 %677  ;;  %v3300_v14 = vpop.permute.xlu0 %619 }
 0x21e   : > { %v690_v15 = vsel %vm492_vm2, %v676_v53, %v3298_v13  ;;  %v1083_v20 = vld [vmem:[#allocation4 + $0x8] sm:$0xff]  ;;  %v1084_v60 = vld [vmem:[#allocation4 + $0x10] sm:$0xff] }
 0x21f   : > { %707 = vst [vmem:[#allocation4 + $0x60] sm:$0xf] %v690_v15  ;;  %v1111_v4 = vld [vmem:[#allocation4 + $0xe8] sm:$0xff] }
 0x220   : > { %v2836_v12 = vpack.c.bf16 %v1111_v4, %v1102_v10 }
 0x221   : > { %v3304_v17 = vpop.permute.xlu1 %795  ;;  %v3306_v18 = vpop.permute.xlu0 %738 }
 0x222   : > { %v809_v19 = vsel %vm805_vm3, %v794_v63, %v3304_v17  ;;  %v1092_v21 = vld [vmem:[#allocation4 + $0x50] sm:$0xff]  ;;  %v1093_v54 = vld [vmem:[#allocation4 + $0x58] sm:$0xff] }
 0x223   : > { %826 = vst [vmem:[#allocation4 + $0xa8] sm:$0xf] %v809_v19  ;;  %v2822_v23 = vpack.c.bf16 %v1092_v21, %v1083_v20  ;;  %v2832_v61 = vpack.c.bf16 %v1093_v54, %v1084_v60 }
 0x225   : > { %v3310_v27 = vpop.permute.xlu1 %915  ;;  %2823 = vmatprep.subr.bf16.mxu1 %v2822_v23  ;;  %v3312_v28 = vpop.permute.xlu0 %857  ;;  %v1120_v23 = vld [vmem:[#allocation4 + $0x130] sm:$0xf] }
 0x226   : > { %v931_v31 = vsel %vm927_vm5, %v914_v3, %v3310_v27  ;;  %2825 = vmatpush1.bf16.msra.mxu1 %v2824_v25 }
 0x227   : > { %949 = vst [vmem:[#allocation4 + $0xf0] sm:$0xf] %v931_v31  ;;  %2827 = vmatprep.subr.bf16.mxu1 %v2826_v29 }
 0x229   : > { %v3316_v34 = vpop.permute.xlu1 %1041  ;;  %v3318_v35 = vpop.permute.xlu0 %980 }
 0x22a   : > { %v1057_v36 = vsel %vm1053_vm6, %v1040_v8, %v3316_v34  ;;  %2829 = vmatpush1.bf16.msra.mxu1 %v2828_v33 }
 0x22b   : > { %1075 = vst [vmem:[#allocation4 + $0x138] sm:$0xf] %v1057_v36  ;;  %2719 = vmatprep.subr.msk.mxu1 %vm1137_vm7, %v1119_v37 }
 0x22d   : > { %v3328_v39 = vpop.permute.xlu1 %681  ;;  %v618_v40 = vpop.permute.xlu0 %617 }
 0x22e   : > { %v631_v42 = vsel %vm627_vm15, %v3270_v52, %v618_v40  ;;  %v632_v43 = vsel %vm627_vm15, %v618_v40, %v3300_v14  ;;  %2720 = vmatpush1.msk.msra.mxu1 %vm1137_vm7, %v1118_v41 }
 0x22f   : > { %648 = vst [vmem:[#allocation4 + $0x18] sm:$0xf0] %v631_v42  ;;  %649 = vst [vmem:[#allocation4 + $0x20] sm:$0xf0] %v632_v43  ;;  %2721 = vmatmul.mubr.msk.f32.vlgmr.msra.gmra.mrb[8].mxu1 %vm1133_vm8, %v3326_v38 }
 0x230   : > { %1371 = vmatprep.mubr.f32.mxu1 %v2992_v11 }
 0x231   : > { %v3338_v44 = vpop.permute.xlu1 %799  ;;  %v737_v45 = vpop.permute.xlu0 %736 }
 0x232   : > { %v750_v46 = vsel %vm746_vm0, %v3273_v55, %v737_v45  ;;  %v751_v47 = vsel %vm746_vm0, %v737_v45, %v3306_v18  ;;  %v1121_v20 = vld [vmem:[#allocation4 + $0x138] sm:$0xf] }
 0x233   : > { %767 = vst [vmem:[#allocation4 + $0x60] sm:$0xf0] %v750_v46  ;;  %768 = vst [vmem:[#allocation4 + $0x68] sm:$0xf0] %v751_v47 }
 0x235   : > { %v3344_v48 = vpop.permute.xlu1 %919  ;;  %v856_v49 = vpop.permute.xlu0 %855 }
 0x236   : > { %v869_v50 = vsel %vm865_vm1, %v3277_v58, %v856_v49  ;;  %v870_v51 = vsel %vm865_vm1, %v856_v49, %v3312_v28  ;;  %v1085_v57 = vld [vmem:[#allocation4 + $0x18] sm:$0xff]  ;;  %v1086_v41 = vld [vmem:[#allocation4 + $0x20] sm:$0xff] }
 0x237   : > { %886 = vst [vmem:[#allocation4 + $0xa8] sm:$0xf0] %v869_v50  ;;  %887 = vst [vmem:[#allocation4 + $0xb0] sm:$0xf0] %v870_v51 }
 0x239   : > { %v3350_v52 = vpop.permute.xlu1 %685  ;;  %v979_v53 = vpop.permute.xlu0 %978 }
 0x23a   : > { %712 = vst.msk [vmem:[#allocation4 + $0x88] sm:$0xf] %vm592_vm14, %v3350_v52  ;;  %v994_v55 = vsel %vm990_vm4, %v3283_v62, %v979_v53  ;;  %v995_v56 = vsel %vm990_vm4, %v979_v53, %v3318_v35  ;;  %v1094_v58 = vld [vmem:[#allocation4 + $0x60] sm:$0xff] }
 0x23b   : > { %1012 = vst [vmem:[#allocation4 + $0xf0] sm:$0xf0] %v994_v55  ;;  %1013 = vst [vmem:[#allocation4 + $0xf8] sm:$0xf0] %v995_v56  ;;  %v2830_v59 = vpack.c.bf16 %v1094_v58, %v1085_v57 }
 0x23d   : > { %v3358_v63 = vpop.permute.xlu1 %803  ;;  %2831 = vmatprep.subr.bf16.mxu0 %v2830_v59  ;;  %v680_v0 = vpop.permute.xlu0 %679 }
 0x23e   : > { %831 = vst.msk [vmem:[#allocation4 + $0xd0] sm:$0xf] %vm592_vm14, %v3358_v63  ;;  %v691_v62 = vsel %vm492_vm2, %v3298_v13, %v680_v0  ;;  %v692_v1 = vsel %vm492_vm2, %v680_v0, %v3328_v39  ;;  %2833 = vmatpush1.bf16.msra.mxu0 %v2832_v61  ;;  %v1103_v7 = vld [vmem:[#allocation4 + $0xa8] sm:$0xff] }
 0x23f   : > { %708 = vst [vmem:[#allocation4 + $0x68] sm:$0xf] %v691_v62  ;;  %709 = vst [vmem:[#allocation4 + $0x70] sm:$0xf] %v692_v1 }
 0x241   : > { %v3366_v2 = vpop.permute.xlu1 %923  ;;  %v798_v3 = vpop.permute.xlu0 %797 }
 0x242   : > { %v810_v5 = vsel %vm805_vm3, %v3304_v17, %v798_v3  ;;  %v811_v6 = vsel %vm805_vm3, %v798_v3, %v3338_v44  ;;  %v1112_v8 = vld [vmem:[#allocation4 + $0xf0] sm:$0xff] }
 0x243   : > { %827 = vst [vmem:[#allocation4 + $0xb0] sm:$0xf] %v810_v5  ;;  %828 = vst [vmem:[#allocation4 + $0xb8] sm:$0xf] %v811_v6  ;;  %v2834_v9 = vpack.c.bf16 %v1112_v8, %v1103_v7 }
 0x245   : > { %v622_v13 = vpop.permute.xlu1 %621  ;;  %2835 = vmatprep.subr.bf16.mxu0 %v2834_v9  ;;  %v918_v15 = vpop.permute.xlu0 %917 }
 0x246   : > { %v633_v16 = vsel %vm627_vm15, %v3300_v14, %v622_v13  ;;  %v932_v19 = vsel %vm927_vm5, %v3310_v27, %v918_v15  ;;  %v933_v17 = vsel %vm927_vm5, %v918_v15, %v3344_v48  ;;  %2837 = vmatpush1.bf16.msra.mxu0 %v2836_v12  ;;  %v1095_v31 = vld [vmem:[#allocation4 + $0x68] sm:$0xff] }
 0x247   : > { %650 = vst [vmem:[#allocation4 + $0x28] sm:$0xf0] %v633_v16  ;;  %950 = vst [vmem:[#allocation4 + $0xf8] sm:$0xf] %v932_v19  ;;  %2722 = vmatprep.subr.msk.mxu0 %vm1137_vm7, %v1121_v20 }
 0x248   : > { %951 = vst [vmem:[#allocation4 + $0x100] sm:$0xf] %v933_v17 }
 0x249   : > { %v741_v21 = vpop.permute.xlu1 %740  ;;  %v624_v22 = vpop.permute.xlu0 %623 }
 0x24a   : > { %v752_v24 = vsel %vm746_vm0, %v3306_v18, %v741_v21  ;;  %v634_v14 = vsel %vm627_vm15, %v622_v13, %v624_v22  ;;  %2723 = vmatpush1.msk.msra.mxu0 %vm1137_vm7, %v1120_v23  ;;  %v1104_v57 = vld [vmem:[#allocation4 + $0xb0] sm:$0xff] }
 0x24b   : > { %769 = vst [vmem:[#allocation4 + $0x70] sm:$0xf0] %v752_v24  ;;  %651 = vst [vmem:[#allocation4 + $0x30] sm:$0xf0] %v634_v14  ;;  %2724 = vmatmul.mubr.msk.f32.vlgmr.msra.gmra.mrb[0].mxu0 %vm1133_vm8, %v3326_v38 }
 0x24c   : > { %1442 = vmatprep.mubr.f32.mxu0 %v2992_v11 }
 0x24d   : > { %v860_v25 = vpop.permute.xlu1 %859  ;;  %v743_v26 = vpop.permute.xlu0 %742 }
 0x24e   : > { %v871_v27 = vsel %vm865_vm1, %v3312_v28, %v860_v25  ;;  %v753_v29 = vsel %vm746_vm0, %v741_v21, %v743_v26  ;;  %v1087_v36 = vld [vmem:[#allocation4 + $0x28] sm:$0xff]  ;;  %v2840_v28 = vpack.c.bf16 %v1095_v31, %v1086_v41  ;;  %v1113_v49 = vld [vmem:[#allocation4 + $0xf8] sm:$0xff] }
 0x24f   : > { %888 = vst [vmem:[#allocation4 + $0xb8] sm:$0xf0] %v871_v27  ;;  %770 = vst [vmem:[#allocation4 + $0x78] sm:$0xf0] %v753_v29  ;;  %v2844_v58 = vpack.c.bf16 %v1113_v49, %v1104_v57 }
 0x251   : > { %v983_v18 = vpop.permute.xlu1 %982  ;;  %v862_v30 = vpop.permute.xlu0 %861 }
 0x252   : > { %v996_v32 = vsel %vm990_vm4, %v3318_v35, %v983_v18  ;;  %v872_v33 = vsel %vm865_vm1, %v860_v25, %v862_v30  ;;  %v1096_v37 = vld [vmem:[#allocation4 + $0x70] sm:$0xff] }
 0x253   : > { %1014 = vst [vmem:[#allocation4 + $0x100] sm:$0xf0] %v996_v32  ;;  %889 = vst [vmem:[#allocation4 + $0xc0] sm:$0xf0] %v872_v33  ;;  %v2838_v40 = vpack.c.bf16 %v1096_v37, %v1087_v36  ;;  %v1088_v1 = vld [vmem:[#allocation4 + $0x30] sm:$0xff]  ;;  %v3016_v32 = vmov 0.0|0.0  }
 0x255   : > { %v626_v42 = vpop.permute.xlu1 %625  ;;  %2839 = vmatprep.subr.bf16.mxu1 %v2838_v40  ;;  %v985_v43 = vpop.permute.xlu0 %984 }
 0x256   : > { %v635_v45 = vsel %vm627_vm15, %v624_v22, %v626_v42  ;;  %654 = vst.msk [vmem:[#allocation4 + $0x40] sm:$0xf0] %vm653_vm9, %v626_v42  ;;  %v997_v46 = vsel %vm990_vm4, %v983_v18, %v985_v43  ;;  %2841 = vmatpush1.bf16.msra.mxu1 %v2840_v28  ;;  %v1105_v54 = vld [vmem:[#allocation4 + $0xb8] sm:$0xff] }
 0x257   : > { %652 = vst [vmem:[#allocation4 + $0x38] sm:$0xf0] %v635_v45  ;;  %1015 = vst [vmem:[#allocation4 + $0x108] sm:$0xf0] %v997_v46 }
 0x259   : > { %v745_v35 = vpop.permute.xlu1 %744  ;;  %v684_v47 = vpop.permute.xlu0 %683 }
 0x25a   : > { %v754_v50 = vsel %vm746_vm0, %v743_v26, %v745_v35  ;;  %772 = vst.msk [vmem:[#allocation4 + $0x88] sm:$0xf0] %vm653_vm9, %v745_v35  ;;  %v693_v51 = vsel %vm492_vm2, %v3328_v39, %v684_v47  ;;  %v694_v53 = vsel %vm492_vm2, %v684_v47, %v3350_v52  ;;  %v1114_v55 = vld [vmem:[#allocation4 + $0x100] sm:$0xff]  ;;  %v1528_v47 = vld [vmem:[%s3838_s6] sm:$0xff] }
 0x25b   : > { %771 = vst [vmem:[#allocation4 + $0x80] sm:$0xf0] %v754_v50  ;;  %710 = vst [vmem:[#allocation4 + $0x78] sm:$0xf] %v693_v51  ;;  %v2842_v56 = vpack.c.bf16 %v1114_v55, %v1105_v54 }
 0x25c   : > { %711 = vst [vmem:[#allocation4 + $0x80] sm:$0xf] %v694_v53 }
 0x25d   : > { %v864_v59 = vpop.permute.xlu1 %863  ;;  %2843 = vmatprep.subr.bf16.mxu1 %v2842_v56  ;;  %v802_v60 = vpop.permute.xlu0 %801 }
 0x25e   : > { %v873_v61 = vsel %vm865_vm1, %v862_v30, %v864_v59  ;;  %891 = vst.msk [vmem:[#allocation4 + $0xd0] sm:$0xf0] %vm653_vm9, %v864_v59  ;;  %v812_v39 = vsel %vm805_vm3, %v3338_v44, %v802_v60  ;;  %v813_v52 = vsel %vm805_vm3, %v802_v60, %v3358_v63  ;;  %2845 = vmatpush1.bf16.msra.mxu1 %v2844_v58  ;;  %v1089_v6 = vld [vmem:[#allocation4 + $0x38] sm:$0xff]  ;;  %v1090_v30 = vld [vmem:[#allocation4 + $0x40] sm:$0xff] }
 0x25f   : > { %890 = vst [vmem:[#allocation4 + $0xc8] sm:$0xf0] %v873_v61  ;;  %829 = vst [vmem:[#allocation4 + $0xc0] sm:$0xf] %v812_v39 }
 0x260   : > { %830 = vst [vmem:[#allocation4 + $0xc8] sm:$0xf] %v813_v52 }
 0x261   : > { %v987_v0 = vpop.permute.xlu1 %986  ;;  %v922_v62 = vpop.permute.xlu0 %921  ;;  %v1099_v25 = vld [vmem:[#allocation4 + $0x88] sm:$0xff] }
 0x262   : > { %v998_v3 = vsel %vm990_vm4, %v985_v43, %v987_v0  ;;  %v934_v4 = vsel %vm927_vm5, %v3344_v48, %v922_v62  ;;  %v935_v5 = vsel %vm927_vm5, %v922_v62, %v3366_v2  ;;  %v1097_v7 = vld [vmem:[#allocation4 + $0x78] sm:$0xff]  ;;  %v2855_v31 = vpack.c.bf16 %v1099_v25, %v1090_v30 }
 0x263   : > { %v1098_v44 = vld [vmem:[#allocation4 + $0x80] sm:$0xff]  ;;  %1016 = vst [vmem:[#allocation4 + $0x110] sm:$0xf0] %v998_v3  ;;  %952 = vst [vmem:[#allocation4 + $0x108] sm:$0xf] %v934_v4  ;;  %v2848_v8 = vpack.c.bf16 %v1097_v7, %v1088_v1  ;;  %v1532_v43 = vlaneseq }
 0x264   : > { %953 = vst [vmem:[#allocation4 + $0x110] sm:$0xf] %v935_v5  ;;  %v2846_v63 = vpack.c.bf16 %v1098_v44, %v1089_v6 }
 0x265   : > { %v1046_v9 = vpop.permute.xlu1 %1045  ;;  %v1044_v10 = vpop.permute.xlu0 %1043  ;;  %v1108_v40 = vld [vmem:[#allocation4 + $0xd0] sm:$0xff]  ;;  %v1533_v45 = vshrl.u32 %v1532_v43, 7 }
 0x266   : > { %2847 = vmatprep.subr.bf16.mxu0 %v2846_v63  ;;  %v1058_v12 = vsel %vm1053_vm6, %v3316_v34, %v1044_v10  ;;  %v1059_v13 = vsel %vm1053_vm6, %v1044_v10, %v1046_v9  ;;  %v1106_v21 = vld [vmem:[#allocation4 + $0xc0] sm:$0xff] }
 0x267   : > { %2849 = vmatpush1.bf16.msra.mxu0 %v2848_v8  ;;  %1076 = vst [vmem:[#allocation4 + $0x140] sm:$0xf] %v1058_v12  ;;  %1077 = vst [vmem:[#allocation4 + $0x148] sm:$0xf] %v1059_v13  ;;  %v1107_v16 = vld [vmem:[#allocation4 + $0xc8] sm:$0xff]  ;;  %v1534_v46 = vsub.s32 0, %v1533_v45 }
 0x268   : > { %v1538_v49 = vsub.s32 1, %v1533_v45  ;;  %v1542_v60 = vsub.s32 2, %v1533_v45  ;;  %v1546_v61 = vsub.s32 3, %v1533_v45  ;;  %v1550_v7 = vsub.s32 4, %v1533_v45 }
 0x269   : > { %v1050_v48 = vpop.permute.xlu1 %1049  ;;  %v1048_v15 = vpop.permute.xlu0 %1047  ;;  %v1535_v53 = vrot.slane %v1528_v47, %v1534_v46  ;;  %v1554_v63 = vsub.s32 5, %v1533_v45  ;;  %v1558_v13 = vsub.s32 6, %v1533_v45 }
 0x26a   : > { %v1060_v19 = vsel %vm1053_vm6, %v1046_v9, %v1048_v15  ;;  %v1061_v17 = vsel %vm1053_vm6, %v1048_v15, %v1050_v48  ;;  %v1115_v22 = vld [vmem:[#allocation4 + $0x108] sm:$0xff]  ;;  %v1547_v3 = vrot.slane %v1528_v47, %v1546_v61  ;;  %v1551_v10 = vrot.slane %v1528_v47, %v1550_v7 }
 0x26b   : > { %v1116_v20 = vld [vmem:[#allocation4 + $0x110] sm:$0xff]  ;;  %1078 = vst [vmem:[#allocation4 + $0x150] sm:$0xf] %v1060_v19  ;;  %1079 = vst [vmem:[#allocation4 + $0x158] sm:$0xf] %v1061_v17  ;;  %v2852_v24 = vpack.c.bf16 %v1115_v22, %v1106_v21  ;;  %v1555_v15 = vrot.slane %v1528_v47, %v1554_v63 }
 0x26c   : > { %v2850_v23 = vpack.c.bf16 %v1116_v20, %v1107_v16  ;;  %v1562_v16 = vsub.s32 7, %v1533_v45 }
 0x26d   : > { %v989_v34 = vpop.permute.xlu1 %988  ;;  %v926_v14 = vpop.permute.xlu0 %925 }
 0x26e   : > { %2851 = vmatprep.subr.bf16.mxu0 %v2850_v23  ;;  %v999_v26 = vsel %vm990_vm4, %v987_v0, %v989_v34  ;;  %v936_v27 = vsel %vm927_vm5, %v3366_v2, %v926_v14  ;;  %v1123_v29 = vld [vmem:[#allocation4 + $0x148] sm:$0xf]  ;;  %v1122_v18 = vld [vmem:[#allocation4 + $0x140] sm:$0xf]  ;;  %v1543_v0 = vrot.slane %v1528_v47, %v1542_v60  ;;  %v1559_v23 = vrot.slane %v1528_v47, %v1558_v13 }
 0x26f   : > { %2853 = vmatpush1.bf16.msra.mxu0 %v2852_v24  ;;  %1017 = vst.msk [vmem:[#allocation4 + $0x118] sm:$0xf0] %vm653_vm9, %v999_v26  ;;  %2725 = vmatprep.subr.msk.mxu1 %vm1137_vm7, %v1123_v29  ;;  %v1563_v25 = vrot.slane %v1528_v47, %v1562_v16  ;;  %vm1640_vm9 = vcmask 809984  }
 0x270   : > { %954 = vst.msk [vmem:[#allocation4 + $0x118] sm:$0xf] %vm592_vm14, %v936_v27  ;;  %2726 = vmatpush1.msk.msra.mxu1 %vm1137_vm7, %v1122_v18 }
 0x271   : > { %2727 = vmatmul.mubr.msk.f32.vlgmr.msra.gmra.mrb[10].mxu1 %vm1133_vm8, %v3326_v38  ;;  %2854 = vmatprep.subr.bf16.mxu1 %v3016_v32  ;;  %v1052_v2 = vpop.permute.xlu0 %1051 }
 0x272   : > { %v1062_v33 = vsel %vm1053_vm6, %v1050_v48, %v1052_v2  ;;  %2856 = vmatpush3.bf16.msra.mxu1 %v2855_v31  ;;  %v1125_v36 = vld [vmem:[#allocation4 + $0x158] sm:$0xf]  ;;  %v1124_v37 = vld [vmem:[#allocation4 + $0x150] sm:$0xf]  ;;  %2794 = vmatprep.mubr.msk.f32.mxu1 %vm3017_vm10, %v2992_v11 }
 0x273   : > { %1080 = vst.msk [vmem:[#allocation4 + $0x160] sm:$0xf] %vm592_vm14, %v1062_v33  ;;  %2728 = vmatprep.subr.msk.mxu0 %vm1137_vm7, %v1125_v36  ;;  %2857 = vmatprep.subr.bf16.mxu1 %v3016_v32  ;;  %v2733_v33 = vld [vmem:[%s3838_s6 + $0x8] ss:$0 sm:$0xff] }
 0x274   : > { %2729 = vmatpush1.msk.msra.mxu0 %vm1137_vm7, %v1124_v37 }
 0x275   : > { %2730 = vmatmul.mubr.msk.f32.vlgmr.msra.gmra.mrb[2].mxu0 %vm1133_vm8, %v3326_v38 }
 0x276   : > { %2328 = vmatprep.mubr.f32.mxu0 %v2992_v11 }
 0x277   : > { %v1117_v41 = vld [vmem:[#allocation4 + $0x118] sm:$0xff] }
 0x278   : > { %v2858_v28 = vpack.c.bf16 %v1117_v41, %v1108_v40 }
 0x27a   : > { %2859 = vmatpush3.bf16.msra.mxu1 %v2858_v28  ;;  %v1126_v42 = vld [vmem:[#allocation4 + $0x160] sm:$0xf] }
 0x27b   : > { %2792 = vmatprep.subr.mxu1 %v2992_v11 }
 0x27e   : > { %2793 = vmatpush3.msk.msra.mxu1 %vm1137_vm7, %v1126_v42  ;;  %v1131_v35 = vpop.permute.xlu1 %1130  ;;  %vm1613_vm7 = vcmask 285696  }
 0x27f   : > { %2795 = vmatmul.mubr.msk.f32.vlgmr.msra.gmra.mrb[12].mxu1 %vm1133_vm8, %v3326_v38  ;;  %v1539_v38 = vrot.slane %v1528_v47, %v1538_v49  ;;  %vm289_vm8 = vcmask 310272  }
 0x280   : > { %2399 = vmatprep.mubr.f32.mxu1 %v2992_v11  ;;  %290 = vst.msk [vmem:[#allocation3 + $0x48] sm:$0xff] %vm289_vm8, %v2992_v11 }
 0x302   : > { %v1231_v50 = vpop.f32.mrb[8].mxu1 }
 0x303   : > { %v1232_v51 = vadd.f32 %v1231_v50, %v1131_v35  ;;  %v1233_v54 = vpop.f32.mrb[9].mxu1 }
 0x304   : > { %v1234_v55 = vadd.f32 %v1233_v54, %v1131_v35 }
 0x305   : > { %v1519_v56 = vmax.f32 %v1232_v51, 0.0 }
 0x306   : > { %v1520_v57 = vmax.f32 %v1234_v55, 0.0 }
 0x307   : > { %v1577_v58 = vmul.f32 %v1535_v53, %v1519_v56 }
 0x308   : > { %v1578_v59 = vmul.f32 %v1539_v38, %v1520_v57 }
 0x309   : > { %1595 = vrot.lane.b32.xlu0 %v1577_v58, %s3018_s20 }
 0x30a   : > { %1597 = vrot.lane.b32.xlu1 %v1578_v59, %s3018_s20 }
 0x31e   : > { %v1302_v39 = vpop.f32.mrb[0].mxu0 }
 0x31f   : > { %v1303_v52 = vadd.f32 %v1302_v39, %v1131_v35  ;;  %v1304_v62 = vpop.f32.mrb[1].mxu0 }
 0x320   : > { %v1305_v1 = vadd.f32 %v1304_v62, %v1131_v35 }
 0x321   : > { %v1521_v4 = vmax.f32 %v1303_v52, 0.0 }
 0x322   : > { %v1522_v5 = vmax.f32 %v1305_v1, 0.0 }
 0x323   : > { %v1579_v6 = vmul.f32 %v1543_v0, %v1521_v4 }
 0x324   : > { %v1580_v44 = vmul.f32 %v1547_v3, %v1522_v5 }
 0x325   : > { %1599 = vrot.lane.b32.xlu0 %v1579_v6, %s3018_s20 }
 0x326   : > { %1601 = vrot.lane.b32.xlu1 %v1580_v44, %s3018_s20 }
 0x344   : > { %v1373_v8 = vpop.f32.mrb[10].mxu1 }
 0x345   : > { %v1374_v9 = vadd.f32 %v1373_v8, %v1131_v35  ;;  %v1375_v12 = vpop.f32.mrb[11].mxu1 }
 0x346   : > { %v1376_v48 = vadd.f32 %v1375_v12, %v1131_v35 }
 0x347   : > { %v1523_v19 = vmax.f32 %v1374_v9, 0.0  ;;  %v2047_v9 = vld [vmem:[#allocation3 + $0x48] sm:$0xff] }
 0x348   : > { %v1524_v17 = vmax.f32 %v1376_v48, 0.0  ;;  %v1444_v20 = vpop.f32.mrb[2].mxu0 }
 0x349   : > { %v1581_v21 = vmul.f32 %v1551_v10, %v1523_v19  ;;  %v1445_v22 = vadd.f32 %v1444_v20, %v1131_v35  ;;  %v1446_v24 = vpop.f32.mrb[3].mxu0 }
 0x34a   : > { %v1582_v34 = vmul.f32 %v1555_v15, %v1524_v17  ;;  %v1447_v14 = vadd.f32 %v1446_v24, %v1131_v35 }
 0x34b   : > { %v1525_v26 = vmax.f32 %v1445_v22, 0.0  ;;  %1603 = vrot.lane.b32.xlu0 %v1581_v21, %s3018_s20  ;;  %v2254_v21 = vld [vmem:[%s3837_s5] sm:$0xf] }
 0x34c   : > { %v1526_v27 = vmax.f32 %v1447_v14, 0.0  ;;  %1605 = vrot.lane.b32.xlu1 %v1582_v34, %s3018_s20 }
 0x34d   : > { %v1583_v29 = vmul.f32 %v1559_v23, %v1525_v26 }
 0x34e   : > { %v1584_v18 = vmul.f32 %v1563_v25, %v1526_v27 }
 0x34f   : > { %1607 = vrot.lane.b32.xlu0 %v1583_v29, %s3018_s20 }
 0x350   : > { %1609 = vrot.lane.b32.xlu1 %v1584_v18, %s3018_s20 }
 0x352   : > { %v1515_v30 = vpop.f32.mrb[12].mxu1 }
 0x353   : > { %v1516_v31 = vadd.f32 %v1515_v30, %v1131_v35  ;;  %v2796_v2 = vpop.f32.mrb[13].mxu1 }
 0x355   : > { %v1527_v36 = vmax.f32 %v1516_v31, 0.0 }
 0x357   : > { %v1585_v37 = vmul.f32 %v2733_v33, %v1527_v36 }
 0x359   : > { %1611 = vrot.lane.b32.xlu0 %v1585_v37, %s3018_s20 }
 0x37b   : > { %v1596_v40 = vpop.permute.xlu0 %1595 }
 0x37c   : > { %1632 = vst.msk [vmem:[#allocation3] sm:$0xff] %vm1631_vm13, %v1596_v40  ;;  %v1598_v41 = vpop.permute.xlu1 %1597 }
 0x37d   : > { %v3460_v28 = vsel %vm1613_vm7, %v1596_v40, %v1598_v41 }
 0x37e   : > { %1652 = vst [vmem:[#allocation4 + $0x8] sm:$0xff] %v3460_v28 }
 0x383   : > { %v3463_v42 = vld [vmem:[#allocation3] sm:$0xff] }
 0x384   : > { %1651 = vst [vmem:[#allocation4] sm:$0xff] %v3463_v42  ;;  %1741 = vrot.lane.b32.xlu0 %v3463_v42, %s3000_s18  ;;  %1679 = vrot.lane.b32.xlu1 %v3463_v42, %s3009_s29 }
 0x388   : > { %1865 = vrot.lane.b32.xlu0 %v3463_v42, %s3013_s10  ;;  %1803 = vrot.lane.b32.xlu1 %v3463_v42, %s3011_s8 }
 0x38c   : > { %1991 = vrot.lane.b32.xlu0 %v3463_v42, %s3014_s11  ;;  %1927 = vrot.lane.b32.xlu1 %v3463_v42, %s3010_s30 }
 0x390   : > { %2125 = vrot.lane.b32.xlu0 %v3463_v42, %s2998_s16  ;;  %2058 = vrot.lane.b32.xlu1 %v3463_v42, %s3012_s9 }
 0x394   : > { %1743 = vrot.lane.b32.xlu0 %v3460_v28, %s3000_s18  ;;  %1681 = vrot.lane.b32.xlu1 %v3460_v28, %s3009_s29 }
 0x397   : > { %v1600_v43 = vpop.permute.xlu0 %1599 }
 0x398   : > { %v3488_v45 = vsel %vm1613_vm7, %v1598_v41, %v1600_v43  ;;  %v1602_v46 = vpop.permute.xlu1 %1601  ;;  %1805 = vrot.lane.b32.xlu0 %v3460_v28, %s3011_s8 }
 0x399   : > { %1653 = vst [vmem:[#allocation4 + $0x10] sm:$0xff] %v3488_v45  ;;  %v3494_v35 = vsel %vm1613_vm7, %v1600_v43, %v1602_v46  ;;  %1745 = vrot.lane.b32.xlu1 %v3488_v45, %s3000_s18 }
 0x39a   : > { %1654 = vst [vmem:[#allocation4 + $0x18] sm:$0xff] %v3494_v35 }
 0x39c   : > { %1867 = vrot.lane.b32.xlu0 %v3460_v28, %s3013_s10 }
 0x39d   : > { %1807 = vrot.lane.b32.xlu1 %v3488_v45, %s3011_s8 }
 0x3a0   : > { %1929 = vrot.lane.b32.xlu0 %v3460_v28, %s3010_s30 }
 0x3a1   : > { %1869 = vrot.lane.b32.xlu1 %v3488_v45, %s3013_s10 }
 0x3a4   : > { %1993 = vrot.lane.b32.xlu0 %v3460_v28, %s3014_s11 }
 0x3a5   : > { %1931 = vrot.lane.b32.xlu1 %v3488_v45, %s3010_s30 }
 0x3a8   : > { %2060 = vrot.lane.b32.xlu0 %v3460_v28, %s3012_s9 }
 0x3a9   : > { %1995 = vrot.lane.b32.xlu1 %v3488_v45, %s3014_s11 }
 0x3ac   : > { %2127 = vrot.lane.b32.xlu0 %v3460_v28, %s2998_s16 }
 0x3ad   : > { %2062 = vrot.lane.b32.xlu1 %v3488_v45, %s3012_s9 }
 0x3b0   : > { %1683 = vrot.lane.b32.xlu0 %v3488_v45, %s3009_s29 }
 0x3b1   : > { %2129 = vrot.lane.b32.xlu1 %v3488_v45, %s2998_s16 }
 0x3b4   : > { %1685 = vrot.lane.b32.xlu0 %v3494_v35, %s3009_s29 }
 0x3b5   : > { %1871 = vrot.lane.b32.xlu1 %v3494_v35, %s3013_s10 }
 0x3b8   : > { %1747 = vrot.lane.b32.xlu0 %v3494_v35, %s3000_s18 }
 0x3b9   : > { %1933 = vrot.lane.b32.xlu1 %v3494_v35, %s3010_s30 }
 0x3bc   : > { %1809 = vrot.lane.b32.xlu0 %v3494_v35, %s3011_s8 }
 0x3bd   : > { %v1604_v47 = vpop.permute.xlu0 %1603  ;;  %1997 = vrot.lane.b32.xlu1 %v3494_v35, %s3014_s11 }
 0x3be   : > { %v3536_v49 = vsel %vm1613_vm7, %v1602_v46, %v1604_v47  ;;  %v1606_v50 = vpop.permute.xlu1 %1605 }
 0x3bf   : > { %1655 = vst [vmem:[#allocation4 + $0x20] sm:$0xff] %v3536_v49  ;;  %v3540_v51 = vsel %vm1613_vm7, %v1604_v47, %v1606_v50 }
 0x3c0   : > { %1656 = vst [vmem:[#allocation4 + $0x28] sm:$0xff] %v3540_v51  ;;  %1873 = vrot.lane.b32.xlu0 %v3536_v49, %s3013_s10 }
 0x3c1   : > { %v1608_v53 = vpop.permute.xlu0 %1607  ;;  %2064 = vrot.lane.b32.xlu1 %v3494_v35, %s3012_s9 }
 0x3c2   : > { %v3548_v54 = vsel %vm1613_vm7, %v1606_v50, %v1608_v53  ;;  %v1610_v55 = vpop.permute.xlu1 %1609 }
 0x3c3   : > { %1657 = vst [vmem:[#allocation4 + $0x30] sm:$0xff] %v3548_v54  ;;  %v3552_v38 = vsel %vm1613_vm7, %v1608_v53, %v1610_v55 }
 0x3c4   : > { %1658 = vst [vmem:[#allocation4 + $0x38] sm:$0xff] %v3552_v38  ;;  %1935 = vrot.lane.b32.xlu0 %v3536_v49, %s3010_s30 }
 0x3c5   : > { %2131 = vrot.lane.b32.xlu1 %v3494_v35, %s2998_s16 }
 0x3c8   : > { %1999 = vrot.lane.b32.xlu0 %v3536_v49, %s3014_s11 }
 0x3c9   : > { %1687 = vrot.lane.b32.xlu1 %v3536_v49, %s3009_s29 }
 0x3cb   : > { %v1612_v56 = vpop.permute.xlu0 %1611 }
 0x3cc   : > { %v1621_v57 = vsel %vm1613_vm7, %v1610_v55, %v1612_v56  ;;  %2066 = vrot.lane.b32.xlu0 %v3536_v49, %s3012_s9 }
 0x3cd   : > { %1641 = vst.msk [vmem:[#allocation3 + $0x40] sm:$0xff] %vm1640_vm9, %v1621_v57  ;;  %1749 = vrot.lane.b32.xlu1 %v3536_v49, %s3000_s18 }
 0x3d0   : > { %2133 = vrot.lane.b32.xlu0 %v3536_v49, %s2998_s16 }
 0x3d1   : > { %1811 = vrot.lane.b32.xlu1 %v3536_v49, %s3011_s8 }
 0x3d4   : > { %v3572_v58 = vld [vmem:[#allocation3 + $0x40] sm:$0xff]  ;;  %1689 = vrot.lane.b32.xlu0 %v3540_v51, %s3009_s29 }
 0x3d5   : > { %1660 = vst.msk [vmem:[#allocation4 + $0x40] sm:$0xff] %vm1659_vm11, %v3572_v58  ;;  %1751 = vrot.lane.b32.xlu1 %v3540_v51, %s3000_s18 }
 0x3d8   : > { %1753 = vrot.lane.b32.xlu0 %v3548_v54, %s3000_s18 }
 0x3d9   : > { %1813 = vrot.lane.b32.xlu1 %v3540_v51, %s3011_s8 }
 0x3dc   : > { %1815 = vrot.lane.b32.xlu0 %v3548_v54, %s3011_s8 }
 0x3dd   : > { %1875 = vrot.lane.b32.xlu1 %v3540_v51, %s3013_s10 }
 0x3e0   : > { %1877 = vrot.lane.b32.xlu0 %v3548_v54, %s3013_s10 }
 0x3e1   : > { %1937 = vrot.lane.b32.xlu1 %v3540_v51, %s3010_s30 }
 0x3e4   : > { %1939 = vrot.lane.b32.xlu0 %v3548_v54, %s3010_s30 }
 0x3e5   : > { %2001 = vrot.lane.b32.xlu1 %v3540_v51, %s3014_s11 }
 0x3e8   : > { %2003 = vrot.lane.b32.xlu0 %v3548_v54, %s3014_s11 }
 0x3e9   : > { %2068 = vrot.lane.b32.xlu1 %v3540_v51, %s3012_s9 }
 0x3ec   : > { %2070 = vrot.lane.b32.xlu0 %v3548_v54, %s3012_s9 }
 0x3ed   : > { %2135 = vrot.lane.b32.xlu1 %v3540_v51, %s2998_s16 }
 0x3f0   : > { %2137 = vrot.lane.b32.xlu0 %v3548_v54, %s2998_s16 }
 0x3f1   : > { %1691 = vrot.lane.b32.xlu1 %v3548_v54, %s3009_s29 }
 0x3f4   : > { %1695 = vrot.lane.b32.xlu0 %v3572_v58, %s3009_s29 }
 0x3f5   : > { %1693 = vrot.lane.b32.xlu1 %v3552_v38, %s3009_s29 }
 0x3f6   : > { %v1680_v59 = vpop.permute.xlu1 %1679  ;;  %v1742_v60 = vpop.permute.xlu0 %1741 }
 0x3f8   : > { %1757 = vrot.lane.b32.xlu0 %v3572_v58, %s3000_s18 }
 0x3f9   : > { %1755 = vrot.lane.b32.xlu1 %v3552_v38, %s3000_s18 }
 0x3fa   : > { %v1804_v61 = vpop.permute.xlu1 %1803  ;;  %v1866_v39 = vpop.permute.xlu0 %1865 }
 0x3fc   : > { %1819 = vrot.lane.b32.xlu0 %v3572_v58, %s3011_s8 }
 0x3fd   : > { %1817 = vrot.lane.b32.xlu1 %v3552_v38, %s3011_s8 }
 0x3fe   : > { %v1928_v52 = vpop.permute.xlu1 %1927  ;;  %v1992_v0 = vpop.permute.xlu0 %1991 }
 0x400   : > { %1881 = vrot.lane.b32.xlu0 %v3572_v58, %s3013_s10 }
 0x401   : > { %1879 = vrot.lane.b32.xlu1 %v3552_v38, %s3013_s10 }
 0x402   : > { %v2059_v62 = vpop.permute.xlu1 %2058  ;;  %v2126_v1 = vpop.permute.xlu0 %2125 }
 0x404   : > { %1943 = vrot.lane.b32.xlu0 %v3572_v58, %s3010_s30 }
 0x405   : > { %1941 = vrot.lane.b32.xlu1 %v3552_v38, %s3010_s30  ;;  %s3821_s30 = scalar_lea.vmem %s3839_s7, %s2936_s27 }
 0x406   : > { %v1682_v3 = vpop.permute.xlu1 %1681  ;;  %v1744_v4 = vpop.permute.xlu0 %1743 }
 0x407   : > { %v1697_v5 = vsel %vm627_vm15, %v1680_v59, %v1682_v3  ;;  %v3630_v6 = vsel %vm492_vm2, %v1742_v60, %v1744_v4 }
 0x408   : > { %1714 = vst [vmem:[#allocation4 + $0x48] sm:$0xff] %v1697_v5  ;;  %1776 = vst [vmem:[#allocation4 + $0x90] sm:$0xff] %v3630_v6  ;;  %2007 = vrot.lane.b32.xlu0 %v3572_v58, %s3014_s11  ;;  %v2862_v40 = vpack.c.bf16 %v1697_v5, %v3463_v42  ;;  %v3689_v5 = vld [vmem:[%s3836_s4] sm:$0xf] }
 0x409   : > { %2005 = vrot.lane.b32.xlu1 %v3552_v38, %s3014_s11 }
 0x40a   : > { %v1806_v44 = vpop.permute.xlu0 %1805 }
 0x40b   : > { %v1821_v7 = vsel %vm746_vm0, %v1804_v61, %v1806_v44  ;;  %v1746_v63 = vpop.permute.xlu1 %1745 }
 0x40c   : > { %1838 = vst [vmem:[#allocation4 + $0xd8] sm:$0xff] %v1821_v7  ;;  %v1760_v8 = vsel %vm492_vm2, %v1744_v4, %v1746_v63  ;;  %2074 = vrot.lane.b32.xlu0 %v3572_v58, %s3012_s9  ;;  %v2866_v53 = vpack.c.bf16 %v1821_v7, %v3630_v6 }
 0x40d   : > { %1777 = vst [vmem:[#allocation4 + $0x98] sm:$0xff] %v1760_v8  ;;  %2072 = vrot.lane.b32.xlu1 %v3552_v38, %s3012_s9 }
 0x40e   : > { %v1868_v10 = vpop.permute.xlu0 %1867 }
 0x40f   : > { %v1883_v12 = vsel %vm805_vm3, %v1866_v39, %v1868_v10  ;;  %v1808_v13 = vpop.permute.xlu1 %1807 }
 0x410   : > { %1900 = vst [vmem:[#allocation4 + $0x120] sm:$0xff] %v1883_v12  ;;  %v1822_v48 = vsel %vm746_vm0, %v1806_v44, %v1808_v13  ;;  %2076 = vrot.lane.b32.xlu0 %v2047_v9, %s3012_s9 }
 0x411   : > { %1839 = vst [vmem:[#allocation4 + $0xe0] sm:$0xff] %v1822_v48  ;;  %2009 = vrot.lane.b32.xlu1 %v2047_v9, %s3014_s11  ;;  %v2864_v43 = vpack.c.bf16 %v1822_v48, %v1760_v8 }
 0x412   : > { %v1930_v15 = vpop.permute.xlu0 %1929 }
 0x413   : > { %v1945_v16 = vsel %vm865_vm1, %v1928_v52, %v1930_v15  ;;  %v1870_v19 = vpop.permute.xlu1 %1869 }
 0x414   : > { %v1884_v17 = vsel %vm805_vm3, %v1868_v10, %v1870_v19  ;;  %2141 = vrot.lane.b32.xlu0 %v3572_v58, %s2998_s16  ;;  %v2870_v58 = vpack.c.bf16 %v1945_v16, %v1883_v12 }
 0x415   : > { %1901 = vst [vmem:[#allocation4 + $0x128] sm:$0xff] %v1884_v17  ;;  %2139 = vrot.lane.b32.xlu1 %v3552_v38, %s2998_s16 }
 0x416   : > { %v1994_v20 = vpop.permute.xlu0 %1993 }
 0x417   : > { %v2011_v22 = vsel %vm927_vm5, %v1992_v0, %v1994_v20  ;;  %v1932_v23 = vpop.permute.xlu1 %1931 }
 0x418   : > { %v1946_v24 = vsel %vm865_vm1, %v1930_v15, %v1932_v23  ;;  %2257 = vperm.xlu0 %2973, %v2254_v21  }
 0x419   : > { %2143 = vrot.lane.b32.xlu1 %v2047_v9, %s2998_s16 }
 0x41a   : > { %v2061_v34 = vpop.permute.xlu0 %2060 }
 0x41b   : > { %v2078_v14 = vsel %vm990_vm4, %v2059_v62, %v2061_v34  ;;  %v1996_v25 = vpop.permute.xlu1 %1995 }
 0x41c   : > { %v2012_v26 = vsel %vm927_vm5, %v1994_v20, %v1996_v25  ;;  %v2874_v0 = vpack.c.bf16 %v2078_v14, %v2011_v22 }
 0x41e   : > { %v2128_v27 = vpop.permute.xlu0 %2127 }
 0x41f   : > { %v2145_v29 = vsel %vm1053_vm6, %v2126_v1, %v2128_v27  ;;  %v2063_v18 = vpop.permute.xlu1 %2062 }
 0x420   : > { %v2079_v30 = vsel %vm990_vm4, %v2061_v34, %v2063_v18 }
 0x421   : > { %v2872_v60 = vpack.c.bf16 %v2079_v30, %v2012_v26 }
 0x422   : > { %v1684_v31 = vpop.permute.xlu0 %1683 }
 0x423   : > { %v1698_v2 = vsel %vm627_vm15, %v1682_v3, %v1684_v31  ;;  %v2130_v33 = vpop.permute.xlu1 %2129 }
 0x424   : > { %1715 = vst [vmem:[#allocation4 + $0x50] sm:$0xff] %v1698_v2  ;;  %v2146_v36 = vsel %vm1053_vm6, %v2128_v27, %v2130_v33  ;;  %v2860_v37 = vpack.c.bf16 %v1698_v2, %v3460_v28  ;;  %v2868_v28 = vpack.c.bf16 %v1946_v24, %v1884_v17 }
 0x426   : > { %v1686_v41 = vpop.permute.xlu0 %1685  ;;  %2861 = vmatprep.subr.bf16.mxu0 %v2860_v37 }
 0x427   : > { %v1699_v46 = vsel %vm627_vm15, %v1684_v31, %v1686_v41  ;;  %v1872_v47 = vpop.permute.xlu1 %1871  ;;  %2863 = vmatpush1.bf16.msra.mxu0 %v2862_v40 }
 0x428   : > { %1716 = vst [vmem:[#allocation4 + $0x58] sm:$0xff] %v1699_v46  ;;  %v3669_v50 = vsel %vm805_vm3, %v1870_v19, %v1872_v47  ;;  %2865 = vmatprep.subr.bf16.mxu0 %v2864_v43  ;;  %v2878_v15 = vpack.c.bf16 %v1699_v46, %v3488_v45 }
 0x429   : > { %1902 = vst [vmem:[#allocation4 + $0x130] sm:$0xff] %v3669_v50 }
 0x42a   : > { %v1748_v55 = vpop.permute.xlu0 %1747 }
 0x42b   : > { %v1761_v42 = vsel %vm492_vm2, %v1746_v63, %v1748_v55  ;;  %v1934_v56 = vpop.permute.xlu1 %1933  ;;  %2867 = vmatpush1.bf16.msra.mxu0 %v2866_v53 }
 0x42c   : > { %1778 = vst [vmem:[#allocation4 + $0xa0] sm:$0xff] %v1761_v42  ;;  %v3675_v57 = vsel %vm865_vm1, %v1932_v23, %v1934_v56  ;;  %2869 = vmatprep.subr.bf16.mxu0 %v2868_v28 }
 0x42e   : > { %v1810_v59 = vpop.permute.xlu0 %1809 }
 0x42f   : > { %v1823_v61 = vsel %vm746_vm0, %v1808_v13, %v1810_v59  ;;  %v1998_v39 = vpop.permute.xlu1 %1997  ;;  %2871 = vmatpush1.bf16.msra.mxu0 %v2870_v58 }
 0x430   : > { %1840 = vst [vmem:[#allocation4 + $0xe8] sm:$0xff] %v1823_v61  ;;  %v3679_v52 = vsel %vm927_vm5, %v1996_v25, %v1998_v39  ;;  %2873 = vmatprep.subr.bf16.mxu0 %v2872_v60  ;;  %v2882_v34 = vpack.c.bf16 %v1823_v61, %v1761_v42 }
 0x432   : > { %v3681_v62 = vpop.permute.xlu0 %1873 }
 0x433   : > { %v1886_v1 = vsel %vm805_vm3, %v1872_v47, %v3681_v62  ;;  %v2065_v3 = vpop.permute.xlu1 %2064  ;;  %2875 = vmatpush1.bf16.msra.mxu0 %v2874_v0 }
 0x434   : > { %1903 = vst [vmem:[#allocation4 + $0x138] sm:$0xff] %v1886_v1  ;;  %v2080_v4 = vsel %vm990_vm4, %v2063_v18, %v2065_v3  ;;  %2280 = vmatprep.subr.mxu0 %v2146_v36 }
 0x435   : > { %v2890_v36 = vpack.c.bf16 %v2080_v4, %v3679_v52 }
 0x436   : > { %v1936_v6 = vpop.permute.xlu0 %1935 }
 0x437   : > { %v1948_v44 = vsel %vm865_vm1, %v1934_v56, %v1936_v6  ;;  %v2132_v7 = vpop.permute.xlu1 %2131  ;;  %2281 = vmatpush1.msra.mxu0 %v2145_v29  ;;  %v2886_v29 = vpack.c.bf16 %v3675_v57, %v3669_v50 }
 0x438   : > { %v2147_v63 = vsel %vm1053_vm6, %v2130_v33, %v2132_v7  ;;  %2734 = vmatmul.mubr.msk.f32.vlgmr.msra.gmra.mrb[4].mxu0 %vm2260_vm12, %v3689_v5  ;;  %v2884_v25 = vpack.c.bf16 %v1948_v44, %v1886_v1 }
 0x439   : > { %2470 = vmatprep.mubr.f32.mxu0 %v2992_v11 }
 0x43a   : > { %v2000_v8 = vpop.permute.xlu0 %1999 }
 0x43b   : > { %v2014_v9 = vsel %vm927_vm5, %v1998_v39, %v2000_v8  ;;  %v1688_v10 = vpop.permute.xlu1 %1687 }
 0x43c   : > { %v1700_v12 = vsel %vm627_vm15, %v1686_v41, %v1688_v10 }
 0x43d   : > { %1717 = vst [vmem:[#allocation4 + $0x60] sm:$0xff] %v1700_v12  ;;  %v2876_v13 = vpack.c.bf16 %v1700_v12, %v3494_v35 }
 0x43e   : > { %v2067_v48 = vpop.permute.xlu0 %2066 }
 0x43f   : > { %v2081_v16 = vsel %vm990_vm4, %v2065_v3, %v2067_v48  ;;  %v1750_v19 = vpop.permute.xlu1 %1749  ;;  %2877 = vmatprep.subr.bf16.mxu1 %v2876_v13 }
 0x440   : > { %v1762_v17 = vsel %vm492_vm2, %v1748_v55, %v1750_v19  ;;  %2879 = vmatpush1.bf16.msra.mxu1 %v2878_v15  ;;  %v2888_v31 = vpack.c.bf16 %v2081_v16, %v2014_v9 }
 0x441   : > { %1779 = vst [vmem:[#allocation4 + $0xa8] sm:$0xff] %v1762_v17 }
 0x442   : > { %v2134_v20 = vpop.permute.xlu0 %2133 }
 0x443   : > { %v2148_v21 = vsel %vm1053_vm6, %v2132_v7, %v2134_v20  ;;  %v1812_v22 = vpop.permute.xlu1 %1811 }
 0x444   : > { %v1824_v23 = vsel %vm746_vm0, %v1810_v59, %v1812_v22 }
 0x445   : > { %1841 = vst [vmem:[#allocation4 + $0xf0] sm:$0xff] %v1824_v23  ;;  %v2880_v24 = vpack.c.bf16 %v1824_v23, %v1762_v17 }
 0x446   : > { %v1690_v35 = vpop.permute.xlu0 %1689 }
 0x447   : > { %v3705_v45 = vsel %vm627_vm15, %v1688_v10, %v1690_v35  ;;  %v1752_v14 = vpop.permute.xlu1 %1751  ;;  %2881 = vmatprep.subr.bf16.mxu1 %v2880_v24 }
 0x448   : > { %1718 = vst [vmem:[#allocation4 + $0x68] sm:$0xff] %v3705_v45  ;;  %v3709_v26 = vsel %vm492_vm2, %v1750_v19, %v1752_v14  ;;  %2883 = vmatpush1.bf16.msra.mxu1 %v2882_v34  ;;  %v2894_v44 = vpack.c.bf16 %v3705_v45, %v3536_v49 }
 0x449   : > { %1780 = vst [vmem:[#allocation4 + $0xb0] sm:$0xff] %v3709_v26  ;;  %2885 = vmatprep.subr.bf16.mxu1 %v2884_v25 }
 0x44a   : > { %v3712_v27 = vpop.permute.xlu0 %1753 }
 0x44b   : > { %v1764_v18 = vsel %vm492_vm2, %v1752_v14, %v3712_v27  ;;  %v1814_v30 = vpop.permute.xlu1 %1813 }
 0x44c   : > { %1781 = vst [vmem:[#allocation4 + $0xb8] sm:$0xff] %v1764_v18  ;;  %v1825_v2 = vsel %vm746_vm0, %v1812_v22, %v1814_v30  ;;  %2887 = vmatpush1.bf16.msra.mxu1 %v2886_v29  ;;  %v2181_v29 = vld [vmem:[#allocation4 + $0x40] sm:$0xff] }
 0x44d   : > { %1842 = vst [vmem:[#allocation4 + $0xf8] sm:$0xff] %v1825_v2  ;;  %2889 = vmatprep.subr.bf16.mxu1 %v2888_v31  ;;  %v2898_v49 = vpack.c.bf16 %v1825_v2, %v3709_v26 }
 0x44e   : > { %v3719_v33 = vpop.permute.xlu0 %1815 }
 0x44f   : > { %v1826_v37 = vsel %vm746_vm0, %v1814_v30, %v3719_v33  ;;  %v1876_v40 = vpop.permute.xlu1 %1875 }
 0x450   : > { %1843 = vst [vmem:[#allocation4 + $0x100] sm:$0xff] %v1826_v37  ;;  %v3726_v41 = vsel %vm805_vm3, %v3681_v62, %v1876_v40  ;;  %2891 = vmatpush1.bf16.msra.mxu1 %v2890_v36 }
 0x451   : > { %1904 = vst [vmem:[#allocation4 + $0x140] sm:$0xff] %v3726_v41  ;;  %2351 = vmatprep.subr.mxu1 %v2148_v21 }
 0x452   : > { %v3729_v43 = vpop.permute.xlu0 %1877 }
 0x453   : > { %v1888_v46 = vsel %vm805_vm3, %v1876_v40, %v3729_v43  ;;  %v1938_v47 = vpop.permute.xlu1 %1937 }
 0x454   : > { %1905 = vst [vmem:[#allocation4 + $0x148] sm:$0xff] %v1888_v46  ;;  %v1949_v50 = vsel %vm865_vm1, %v1936_v6, %v1938_v47  ;;  %2352 = vmatpush1.msra.mxu1 %v2147_v63  ;;  %v2896_v63 = vpack.c.bf16 %v1826_v37, %v1764_v18 }
 0x455   : > { %2735 = vmatmul.mubr.msk.f32.vlgmr.msra.gmra.mrb[14].mxu1 %vm2260_vm12, %v3689_v5 }
 0x456   : > { %v3736_v53 = vpop.permute.xlu0 %1939  ;;  %2541 = vmatprep.mubr.f32.mxu1 %v2992_v11 }
 0x457   : > { %v1950_v55 = vsel %vm865_vm1, %v1938_v47, %v3736_v53  ;;  %v2002_v28 = vpop.permute.xlu1 %2001 }
 0x458   : > { %v3742_v42 = vsel %vm927_vm5, %v2000_v8, %v2002_v28 }
 0x45a   : > { %v3744_v56 = vpop.permute.xlu0 %2003 }
 0x45b   : > { %v2016_v57 = vsel %vm927_vm5, %v2002_v28, %v3744_v56  ;;  %v2069_v58 = vpop.permute.xlu1 %2068 }
 0x45c   : > { %v2082_v59 = vsel %vm990_vm4, %v2067_v48, %v2069_v58  ;;  %v2900_v48 = vpack.c.bf16 %v1950_v55, %v1888_v46 }
 0x45e   : > { %v3749_v60 = vpop.permute.xlu0 %2070 }
 0x45f   : > { %v2083_v61 = vsel %vm990_vm4, %v2069_v58, %v3749_v60  ;;  %v2136_v39 = vpop.permute.xlu1 %2135 }
 0x460   : > { %v3754_v52 = vsel %vm1053_vm6, %v2134_v20, %v2136_v39  ;;  %v2904_v17 = vpack.c.bf16 %v2083_v61, %v2016_v57 }
 0x462   : > { %v3756_v0 = vpop.permute.xlu0 %2137 }
 0x463   : > { %v2150_v62 = vsel %vm1053_vm6, %v2136_v39, %v3756_v0  ;;  %v1692_v1 = vpop.permute.xlu1 %1691 }
 0x464   : > { %v1702_v3 = vsel %vm627_vm15, %v1690_v35, %v1692_v1  ;;  %v2906_v35 = vpack.c.bf16 %v2082_v59, %v3742_v42 }
 0x465   : > { %1719 = vst [vmem:[#allocation4 + $0x70] sm:$0xff] %v1702_v3  ;;  %v2892_v4 = vpack.c.bf16 %v1702_v3, %v3540_v51 }
 0x466   : > { %v1696_v6 = vpop.permute.xlu0 %1695 }
 0x467   : > { %1722 = vst.msk [vmem:[#allocation4 + $0x88] sm:$0xff] %vm1659_vm11, %v1696_v6  ;;  %v1694_v7 = vpop.permute.xlu1 %1693  ;;  %2893 = vmatprep.subr.bf16.mxu0 %v2892_v4 }
 0x468   : > { %v1703_v8 = vsel %vm627_vm15, %v1692_v1, %v1694_v7  ;;  %v1704_v9 = vsel %vm627_vm15, %v1694_v7, %v1696_v6  ;;  %2895 = vmatpush1.bf16.msra.mxu0 %v2894_v44 }
 0x469   : > { %1720 = vst [vmem:[#allocation4 + $0x78] sm:$0xff] %v1703_v8  ;;  %1721 = vst [vmem:[#allocation4 + $0x80] sm:$0xff] %v1704_v9  ;;  %2897 = vmatprep.subr.bf16.mxu0 %v2896_v63  ;;  %v2908_v10 = vpack.c.bf16 %v1704_v9, %v3552_v38  ;;  %v2910_v51 = vpack.c.bf16 %v1703_v8, %v3548_v54  ;;  %v2902_v54 = vpack.c.bf16 %v1949_v50, %v3726_v41 }
 0x46a   : > { %v1758_v12 = vpop.permute.xlu0 %1757 }
 0x46b   : > { %1784 = vst.msk [vmem:[#allocation4 + $0xd0] sm:$0xff] %vm1659_vm11, %v1758_v12  ;;  %v1756_v13 = vpop.permute.xlu1 %1755  ;;  %2909 = vmatprep.subr.bf16.mxu1 %v2908_v10 }
 0x46c   : > { %v1765_v15 = vsel %vm492_vm2, %v3712_v27, %v1756_v13  ;;  %v1766_v16 = vsel %vm492_vm2, %v1756_v13, %v1758_v12  ;;  %2899 = vmatpush1.bf16.msra.mxu0 %v2898_v49  ;;  %2911 = vmatpush1.bf16.msra.mxu1 %v2910_v51 }
 0x46d   : > { %1782 = vst [vmem:[#allocation4 + $0xc0] sm:$0xff] %v1765_v15  ;;  %1783 = vst [vmem:[#allocation4 + $0xc8] sm:$0xff] %v1766_v16  ;;  %2901 = vmatprep.subr.bf16.mxu0 %v2900_v48 }
 0x46e   : > { %v1820_v38 = vpop.permute.xlu0 %1819  ;;  %v2190_v25 = vld [vmem:[#allocation4 + $0x88] sm:$0xff] }
 0x46f   : > { %1846 = vst.msk [vmem:[#allocation4 + $0x118] sm:$0xff] %vm1659_vm11, %v1820_v38  ;;  %v1818_v19 = vpop.permute.xlu1 %1817  ;;  %v2925_v31 = vpack.c.bf16 %v2190_v25, %v2181_v29 }
 0x470   : > { %v1827_v20 = vsel %vm746_vm0, %v3719_v33, %v1818_v19  ;;  %v1828_v21 = vsel %vm746_vm0, %v1818_v19, %v1820_v38  ;;  %2903 = vmatpush1.bf16.msra.mxu0 %v2902_v54 }
 0x471   : > { %1844 = vst [vmem:[#allocation4 + $0x108] sm:$0xff] %v1827_v20  ;;  %1845 = vst [vmem:[#allocation4 + $0x110] sm:$0xff] %v1828_v21  ;;  %2905 = vmatprep.subr.bf16.mxu0 %v2904_v17  ;;  %v2912_v22 = vpack.c.bf16 %v1828_v21, %v1766_v16  ;;  %v2914_v23 = vpack.c.bf16 %v1827_v20, %v1765_v15 }
 0x472   : > { %v1882_v24 = vpop.permute.xlu0 %1881  ;;  %v2199_v41 = vld [vmem:[#allocation4 + $0xd0] sm:$0xff] }
 0x473   : > { %1908 = vst.msk [vmem:[#allocation4 + $0x160] sm:$0xff] %vm1659_vm11, %v1882_v24  ;;  %v1880_v34 = vpop.permute.xlu1 %1879  ;;  %2913 = vmatprep.subr.bf16.mxu1 %v2912_v22 }
 0x474   : > { %v1889_v45 = vsel %vm805_vm3, %v3729_v43, %v1880_v34  ;;  %v1890_v14 = vsel %vm805_vm3, %v1880_v34, %v1882_v24  ;;  %2907 = vmatpush1.bf16.msra.mxu0 %v2906_v35  ;;  %2915 = vmatpush1.bf16.msra.mxu1 %v2914_v23 }
 0x475   : > { %1906 = vst [vmem:[#allocation4 + $0x150] sm:$0xff] %v1889_v45  ;;  %1907 = vst [vmem:[#allocation4 + $0x158] sm:$0xff] %v1890_v14  ;;  %2422 = vmatprep.subr.mxu0 %v2150_v62 }
 0x476   : > { %v1944_v26 = vpop.permute.xlu0 %1943  ;;  %v2208_v36 = vld [vmem:[#allocation4 + $0x118] sm:$0xff] }
 0x477   : > { %1970 = vst.msk [vmem:[#allocation4 + $0x1a8] sm:$0xff] %vm1659_vm11, %v1944_v26  ;;  %v1942_v27 = vpop.permute.xlu1 %1941  ;;  %v2928_v47 = vpack.c.bf16 %v2208_v36, %v2199_v41 }
 0x478   : > { %v1951_v18 = vsel %vm865_vm1, %v3736_v53, %v1942_v27  ;;  %v1952_v30 = vsel %vm865_vm1, %v1942_v27, %v1944_v26  ;;  %2423 = vmatpush1.msra.mxu0 %v3754_v52 }
 0x479   : > { %2924 = vmatprep.subr.bf16.mxu0 %v3016_v32  ;;  %2736 = vmatmul.mubr.msk.f32.vlgmr.msra.gmra.mrb[6].mxu0 %vm2260_vm12, %v3689_v5  ;;  %v2916_v2 = vpack.c.bf16 %v1952_v30, %v1890_v14  ;;  %v2918_v33 = vpack.c.bf16 %v1951_v18, %v1889_v45 }
 0x47a   : > { %v2008_v37 = vpop.permute.xlu0 %2007  ;;  %2926 = vmatpush3.bf16.msra.mxu0 %v2925_v31  ;;  %2815 = vmatprep.mubr.msk.f32.mxu0 %vm3017_vm10, %v2992_v11  ;;  %v2217_v53 = vld [vmem:[#allocation4 + $0x160] sm:$0xff] }
 0x47b   : > { %v2006_v40 = vpop.permute.xlu1 %2005  ;;  %2917 = vmatprep.subr.bf16.mxu1 %v2916_v2  ;;  %2927 = vmatprep.subr.bf16.mxu0 %v3016_v32 }
 0x47c   : > { %v2017_v43 = vsel %vm927_vm5, %v3744_v56, %v2006_v40  ;;  %v2018_v46 = vsel %vm927_vm5, %v2006_v40, %v2008_v37  ;;  %2919 = vmatpush1.bf16.msra.mxu1 %v2918_v33 }
 0x47e   : > { %v2075_v50 = vpop.permute.xlu0 %2074  ;;  %2929 = vmatpush3.bf16.msra.mxu0 %v2928_v47  ;;  %v2226_v55 = vld [vmem:[#allocation4 + $0x1a8] sm:$0xff] }
 0x47f   : > { %v2073_v28 = vpop.permute.xlu1 %2072  ;;  %2930 = vmatprep.subr.bf16.mxu0 %v3016_v32  ;;  %v2931_v42 = vpack.c.bf16 %v2226_v55, %v2217_v53 }
 0x480   : > { %v2084_v57 = vsel %vm990_vm4, %v3749_v60, %v2073_v28  ;;  %v2085_v58 = vsel %vm990_vm4, %v2073_v28, %v2075_v50 }
 0x481   : > { %v2920_v59 = vpack.c.bf16 %v2085_v58, %v2018_v46  ;;  %v2922_v61 = vpack.c.bf16 %v2084_v57, %v2017_v43 }
 0x482   : > { %v2077_v56 = vpop.permute.xlu0 %2076  ;;  %2932 = vmatpush3.bf16.msra.mxu0 %v2931_v42 }
 0x483   : > { %v2086_v39 = vsel %vm990_vm4, %v2075_v50, %v2077_v56  ;;  %v2010_v52 = vpop.permute.xlu1 %2009  ;;  %2921 = vmatprep.subr.bf16.mxu1 %v2920_v59  ;;  %2933 = vmatprep.subr.bf16.mxu0 %v3016_v32 }
 0x484   : > { %2104 = vst.msk [vmem:[#allocation4 + $0x238] sm:$0xff] %vm1659_vm11, %v2086_v39  ;;  %v2019_v62 = vsel %vm927_vm5, %v2008_v37, %v2010_v52  ;;  %2923 = vmatpush1.bf16.msra.mxu1 %v2922_v61 }
 0x485   : > { %2037 = vst.msk [vmem:[#allocation4 + $0x1f0] sm:$0xff] %vm1659_vm11, %v2019_v62 }
 0x486   : > { %v2142_v60 = vpop.permute.xlu0 %2141 }
 0x487   : > { %v2140_v1 = vpop.permute.xlu1 %2139 }
 0x488   : > { %v2151_v3 = vsel %vm1053_vm6, %v3756_v0, %v2140_v1  ;;  %v2152_v4 = vsel %vm1053_vm6, %v2140_v1, %v2142_v60 }
 0x489   : > { %2493 = vmatprep.subr.mxu1 %v2152_v4 }
 0x48a   : > { %2494 = vmatpush1.msra.mxu1 %v2151_v3 }
 0x48b   : > { %v2144_v6 = vpop.permute.xlu1 %2143  ;;  %v2244_v44 = vld [vmem:[#allocation4 + $0x238] sm:$0xff]  ;;  %2737 = vmatmul.mubr.msk.f32.vlgmr.msra.gmra.mrb[16].mxu1 %vm2260_vm12, %v3689_v5 }
 0x48c   : > { %v2153_v32 = vsel %vm1053_vm6, %v2142_v60, %v2144_v6  ;;  %v2235_v7 = vld [vmem:[#allocation4 + $0x1f0] sm:$0xff] }
 0x48d   : > { %2171 = vst.msk [vmem:[#allocation4 + $0x280] sm:$0xff] %vm1659_vm11, %v2153_v32  ;;  %v2934_v63 = vpack.c.bf16 %v2244_v44, %v2235_v7 }
 0x48f   : > { %2935 = vmatpush3.bf16.msra.mxu0 %v2934_v63 }
 0x490   : > { %2813 = vmatprep.subr.mxu0 %v2992_v11 }
 0x494   : > { %v2253_v0 = vld [vmem:[#allocation4 + $0x280] sm:$0xff] }
 0x495   : > { %2814 = vmatpush3.msra.mxu0 %v2253_v0 }
 0x496   : > { %2816 = vmatmul.mubr.msk.f32.vlgmr.msra.gmra.mrb[8].mxu0 %vm2260_vm12, %v3689_v5 }
 0x497   : > { %v2258_v8 = vpop.permute.xlu0 %2257 }
 0x50b   : > { %v2330_v9 = vpop.f32.mrb[4].mxu0 }
 0x50c   : > { %v2332_v10 = vpop.f32.mrb[5].mxu0  ;;  %v2331_v51 = vadd.f32 %v2330_v9, %v2258_v8 }
 0x50d   : > { %v2333_v12 = vadd.f32 %v2332_v10, %v2258_v8 }
 0x50e   : > { %v2618_v49 = vmax.f32 %v2331_v51, 0.0 }
 0x50f   : > { %v2619_v13 = vmax.f32 %v2333_v12, 0.0 }
 0x511   : > { %v2635_v11 = vcombine.low %v2618_v49, %v2619_v13 }
 0x513   : > { %2643 = vst [vmem:[%s3821_s30] sm:$0xff] %v2635_v11 }
 0x528   : > { %v2401_v48 = vpop.f32.mrb[14].mxu1 }
 0x529   : > { %v2402_v5 = vadd.f32 %v2401_v48, %v2258_v8  ;;  %v2403_v15 = vpop.f32.mrb[15].mxu1 }
 0x52a   : > { %v2404_v16 = vadd.f32 %v2403_v15, %v2258_v8 }
 0x52b   : > { %v2620_v38 = vmax.f32 %v2402_v5, 0.0 }
 0x52c   : > { %v2621_v54 = vmax.f32 %v2404_v16, 0.0 }
 0x52e   : > { %v2636_v19 = vcombine.low %v2620_v38, %v2621_v54 }
 0x530   : > { %2644 = vst [vmem:[%s3821_s30 + $0x8] sm:$0xff] %v2636_v19 }
 0x54c   : > { %v2472_v17 = vpop.f32.mrb[6].mxu0 }
 0x54d   : > { %v2473_v20 = vadd.f32 %v2472_v17, %v2258_v8  ;;  %v2474_v21 = vpop.f32.mrb[7].mxu0 }
 0x54e   : > { %v2475_v22 = vadd.f32 %v2474_v21, %v2258_v8 }
 0x54f   : > { %v2622_v23 = vmax.f32 %v2473_v20, 0.0 }
 0x550   : > { %v2623_v24 = vmax.f32 %v2475_v22, 0.0 }
 0x552   : > { %v2637_v35 = vcombine.low %v2622_v23, %v2623_v24 }
 0x554   : > { %2645 = vst [vmem:[%s3821_s30 + $0x10] sm:$0xff] %v2637_v35 }
 0x55e   : > { %v2543_v34 = vpop.f32.mrb[16].mxu1 }
 0x55f   : > { %v2544_v45 = vadd.f32 %v2543_v34, %v2258_v8  ;;  %v2545_v14 = vpop.f32.mrb[17].mxu1 }
 0x560   : > { %v2546_v25 = vadd.f32 %v2545_v14, %v2258_v8 }
 0x561   : > { %v2624_v26 = vmax.f32 %v2544_v45, 0.0 }
 0x562   : > { %v2625_v27 = vmax.f32 %v2546_v25, 0.0 }
 0x564   : > { %v2638_v29 = vcombine.low %v2624_v26, %v2625_v27 }
 0x566   : > { %2646 = vst [vmem:[%s3821_s30 + $0x18] sm:$0xff] %v2638_v29 }
 0x569   : > { %v2614_v18 = vpop.f32.mrb[8].mxu0 }
 0x56a   : > { %v2615_v30 = vadd.f32 %v2614_v18, %v2258_v8  ;;  %v2817_v31 = vpop.f32.mrb[9].mxu0 }
 0x56c   : > { %v2626_v2 = vmax.f32 %v2615_v30, 0.0 }
 0x56e   : > { %2647 = vst.msk [vmem:[%s3821_s30 + $0x20] sm:$0xf] %vm592_vm14, %v2626_v2 }
 0x56f PF: > { %s17_s24 = sadd.s32 1, %s2990_s24  }
 0x570   : > { %p14_p4 = scmp.ge.s32.totalorder %s17_s24, 4  }
 0x572   :  { %16 = sbr.rel (!%p14_p4) target bundleno = 1 (0x1), region = 78 }

</bundles_post_ra>
